<compile_context>
chip_gen: v7x
topology: tpu7x:2x2x1
jax: 0.10.0
libtpu: 0.0.40
codegen_flags: <defaults>
</compile_context>

<pallas_src>
import functools
import numpy as np
import jax
import jax.numpy as jnp
from jax.experimental import pallas as pl
from jax.experimental.pallas import tpu as pltpu

# PCENTransform defaults.
PCEN_EPS = 1e-6
PCEN_S = 0.025
PCEN_ALPHA = 0.98
PCEN_DELTA = 2.0
PCEN_R = 0.5


# ================================ Pallas kernel ================================

def _pcen_kernel(x_ref, l_ref, out_ref, *, eps, alpha, delta, r):
    """PCEN for one (batch, time-tile) block.

    x_ref   : (1, F, Tt) -- smoothing axis F on sublanes, Tt on the lane axis.
    l_ref   : (F, F)     -- lower-triangular IIR smoother (shared across grid).
    out_ref : (1, F, Tt)
    """
    x = x_ref[0]                                               # (F, Tt)
    # Exact replacement of the serial recurrence: one MXU matmul.
    m = jnp.dot(l_ref[...], x, preferred_element_type=jnp.float32,
                precision=jax.lax.Precision.HIGHEST)
    # y = (x / (m+eps)^alpha + delta)^r - delta^r with the divide folded into
    # exp(-alpha * log(.)) and pow(., 0.5) -> sqrt (r is static).
    inv_pow = jnp.exp((-alpha) * jnp.log(m + eps))             # (m+eps)^(-alpha)
    base = x * inv_pow + delta
    if r == 0.5:
        y = jnp.sqrt(base) - delta ** r
    else:
        y = jnp.power(base, r) - delta ** r
    out_ref[0] = y


# ============================== wrapper / glue =================================

def _pcen_smoother(n, s):
    """L such that (L @ x)[f] == M[f] for the first-order IIR above (exact)."""
    idx = np.arange(n)
    diff = idx[:, None] - idx[None, :]
    l = np.where(diff >= 0, s * (1.0 - s) ** np.maximum(diff, 0), 0.0)
    return l.astype(np.float32)


def _pick_time_tile(t):
    """Lane-dense time tile: >=256 fills the 256-wide MXU N on v6e/v7x and
    amortizes per-step overhead; capped at 1024 so double-buffered blocks stay
    well under v7x's 32 MiB scoped-VMEM default (F=64 f32 -> <=256 KiB/block)."""
    for tile in (1024, 512, 256, 128):
        if t % tile == 0:
            return tile
    return t  # full-extent block (allowed even when not a multiple of 128)


def pcen_transform(x, *, eps=PCEN_EPS, s=PCEN_S, alpha=PCEN_ALPHA,
                   delta=PCEN_DELTA, r=PCEN_R):
    """x: (B, F, T) -> PCEN(x), recurrence along dim -2 (matches the PyTorch
    `pcen`, which splits along -2 and cats along dim 1 for 3-D input)."""
    B, F, T = x.shape
    t_tile = _pick_time_tile(T)
    l_mat = jnp.asarray(_pcen_smoother(F, s))                  # (F, F), host-built
    kernel = functools.partial(_pcen_kernel, eps=float(eps), alpha=float(alpha),
                               delta=float(delta), r=float(r))
    return pl.pallas_call(
        kernel,
        out_shape=jax.ShapeDtypeStruct((B, F, T), jnp.float32),
        grid=(B, T // t_tile),
        in_specs=[pl.BlockSpec((1, F, t_tile), lambda b, t: (b, 0, t)),
                  pl.BlockSpec((F, F), lambda b, t: (0, 0))],
        out_specs=pl.BlockSpec((1, F, t_tile), lambda b, t: (b, 0, t)),
        compiler_params=pltpu.CompilerParams(
            dimension_semantics=("parallel", "parallel")),
    )(x.astype(jnp.float32), l_mat)


# ----------------------------- pure-JAX reference ------------------------------

def _pcen_reference(x, eps, s, alpha, delta, r):
    """Direct transcription of the PyTorch `pcen` recurrence (ground truth)."""
    x_t = jnp.moveaxis(x, -2, 0)

    def step(last, frame):
        m = (1.0 - s) * last + s * frame
        return m, m

    m0 = s * x_t[0]
    _, m_rest = jax.lax.scan(step, m0, x_t[1:])
    m = jnp.moveaxis(jnp.concatenate([m0[None], m_rest], axis=0), 0, -2)
    return (x / (m + eps) ** alpha + delta) ** r - delta ** r


# ==================================== main =====================================

if __name__ == "__main__":
    key = jax.random.PRNGKey(0)
    B, F, T = 2, 64, 512          # (batch, mel/freq bins, time frames)
    # Spectrogram-like non-negative input.
    x = jax.random.uniform(key, (B, F, T), jnp.float32, minval=0.0, maxval=1.0)

    y = jax.block_until_ready(jax.jit(pcen_transform)(x))

    y_ref = _pcen_reference(x, PCEN_EPS, PCEN_S, PCEN_ALPHA, PCEN_DELTA, PCEN_R)

    assert y.shape == (B, F, T)
    assert bool(jnp.all(jnp.isfinite(y)))
    np.testing.assert_allclose(np.asarray(y), np.asarray(y_ref),
                               rtol=1e-3, atol=1e-3)
    print("KERNEL_OK")
</pallas_src>

<mosaic_0001>
module attributes {stable_mosaic.version = 11 : i64} {
  func.func @_pcen_kernel(%arg0: i32, %arg1: i32, %arg2: memref<1x64x512xf32, #tpu.memory_space<vmem>>, %arg3: memref<64x64xf32, #tpu.memory_space<vmem>>, %arg4: memref<1x64x512xf32, #tpu.memory_space<vmem>>) attributes {dimension_semantics = [#tpu.dimension_semantics<parallel>, #tpu.dimension_semantics<parallel>], iteration_bounds = array<i64: 2, 1>, scalar_prefetch = 0 : i64, scratch_operands = 0 : i64, tpu.core_type = #tpu.core_type<tc>, window_params = [{transform_indices = @transform_0, window_bounds = array<i64: 1, 64, 512>}, {pipeline_mode = #tpu.pipeline_mode<synchronous>, transform_indices = @transform_1, window_bounds = array<i64: 64, 64>}, {transform_indices = @transform_2, window_bounds = array<i64: 1, 64, 512>}]} {
    %c0 = arith.constant 0 : index
    %c0_0 = arith.constant 0 : index
    %c0_1 = arith.constant 0 : index
    %0 = vector.load %arg2[%c0, %c0_0, %c0_1] : memref<1x64x512xf32, #tpu.memory_space<vmem>>, vector<1x64x512xf32>
    %1 = vector.shape_cast %0 : vector<1x64x512xf32> to vector<64x512xf32>
    %c0_2 = arith.constant 0 : index
    %c0_3 = arith.constant 0 : index
    %2 = vector.load %arg3[%c0_2, %c0_3] : memref<64x64xf32, #tpu.memory_space<vmem>>, vector<64x64xf32>
    %cst = arith.constant dense<0.000000e+00> : vector<64x512xf32>
    %3 = tpu.matmul %2, %1, %cst {dimension_numbers = #tpu.dot_dimension_numbers<[1], [0], [0], [1], [0, 0, 1, 1], [], []>, precision = #tpu.contract_precision<fp32>} : vector<64x64xf32>, vector<64x512xf32>, vector<64x512xf32> -> vector<64x512xf32>
    %cst_4 = arith.constant 9.99999997E-7 : f32
    %4 = vector.broadcast %cst_4 : f32 to vector<64x512xf32>
    %5 = arith.addf %3, %4 : vector<64x512xf32>
    %6 = math.log %5 : vector<64x512xf32>
    %cst_5 = arith.constant -9.800000e-01 : f32
    %7 = vector.broadcast %cst_5 : f32 to vector<64x512xf32>
    %8 = arith.mulf %7, %6 : vector<64x512xf32>
    %9 = math.exp %8 : vector<64x512xf32>
    %10 = arith.mulf %1, %9 : vector<64x512xf32>
    %cst_6 = arith.constant 2.000000e+00 : f32
    %11 = vector.broadcast %cst_6 : f32 to vector<64x512xf32>
    %12 = arith.addf %10, %11 : vector<64x512xf32>
    %13 = math.sqrt %12 : vector<64x512xf32>
    %cst_7 = arith.constant 1.41421354 : f32
    %14 = vector.broadcast %cst_7 : f32 to vector<64x512xf32>
    %15 = arith.subf %13, %14 : vector<64x512xf32>
    %c0_8 = arith.constant 0 : index
    %c0_9 = arith.constant 0 : index
    %c0_10 = arith.constant 0 : index
    %16 = vector.load %arg4[%c0_8, %c0_9, %c0_10] : memref<1x64x512xf32, #tpu.memory_space<vmem>>, vector<1x64x512xf32>
    %17 = vector.shape_cast %16 : vector<1x64x512xf32> to vector<64x512xf32>
    %18 = vector.shape_cast %15 : vector<64x512xf32> to vector<1x64x512xf32>
    tpu.vector_store %arg4[%c0_8, %c0_9, %c0_10], %18 {strides = array<i32>} : memref<1x64x512xf32, #tpu.memory_space<vmem>>, vector<1x64x512xf32>,
    return
  }
  func.func @transform_0(%arg0: i32, %arg1: i32) -> (i32, i32, i32) {
    %c0_i32 = arith.constant 0 : i32
    %c0_i32_0 = arith.constant 0 : i32
    return %arg0, %c0_i32, %arg1 : i32, i32, i32
  }
  func.func @transform_1(%arg0: i32, %arg1: i32) -> (i32, i32) {
    %c0_i32 = arith.constant 0 : i32
    %c0_i32_0 = arith.constant 0 : i32
    %c0_i32_1 = arith.constant 0 : i32
    return %c0_i32, %c0_i32_0 : i32, i32
  }
  func.func @transform_2(%arg0: i32, %arg1: i32) -> (i32, i32, i32) {
    %c0_i32 = arith.constant 0 : i32
    %c0_i32_0 = arith.constant 0 : i32
    return %arg0, %c0_i32, %arg1 : i32, i32, i32
  }
}

</mosaic_0001>

<bundles_post_ra>
// kernel: pcen_transform.1
= control target key start
LH: loop header
LB: loop body
LE: loop exit
PB: predicated region body
PF: predicated region fallthrough
CT: control target
= control target key end

     0   :  { %7 = vsyncpa [#allocation3], 0  ;;  %s5162_s0 = inlined_call_operand.hbm [shape: f32[2,64,512], index: 0, kind: input, shape index: {}]   ;;  %s5163_s1 = inlined_call_operand.hbm [shape: f32[64,64], index: 1, kind: input, shape index: {}]   ;;  %s5164_s2 = inlined_call_operand.hbm [shape: f32[2,64,512], index: 2, kind: output, shape index: {}]  }
   0x1   :  { %9 = vsyncpa [#allocation3 + $0x1], 0 }
   0x2   :  { %10 = vsyncpa [#allocation6], 0 }
   0x3   :  { %11 = vsyncpa [#allocation4], 0 }
   0x4   :  { %13 = vsyncpa [#allocation4 + $0x1], 0  ;;  %s3777_s9 = smov 0   ;;  %s3779_s10 = smov 0  }
   0x5   :  { %s3781_s11 = smov 0   ;;  %s3783_s12 = smov 0  }
   0x6   :  { %s3785_s13 = smov 0   ;;  %s3787_s14 = smov 0  }
   0x7 LB: > { %s2867_s15 = sadd.s32 4294967295, %s3750_s14   ;;  %s2868_s16 = sadd.s32 4294967294, %s3750_s14   ;;  %s3750_s14 = sphi %s3787_s14, %s19_s14   ;;  %s3746_s13 = sphi %s3785_s13, %s5361_s13   ;;  %s3742_s12 = sphi %s3783_s12, %s5360_s12   ;;  %s3738_s11 = sphi %s3781_s11, %s5359_s11   ;;  %s3734_s10 = sphi %s3779_s10, %s5358_s10   ;;  %s3730_s9 = sphi %s3777_s9, %s5357_s9  }
   0x8   : > { %p53_p0 = scmp.ne.s32.totalorder %s3734_s10, %s3730_s9  ;;  %p3811_p1 = scmp.eq.s32.totalorder %s2867_s15, 0 }
   0x9   : > { %p3815_p2 = scmp.eq.s32.totalorder %s2867_s15, 1  ;;  %p106_p3 = scmp.eq.s32.totalorder %s2868_s16, 1 }
   0xa   : > { %s5254_s17 = scalar_select %p3811_p1, 1, 0 }
   0xb   : > { %s5255_s18 = scalar_select %p3815_p2, 1, 0 }
   0xc   : > { %p3821_p4 = por %p3811_p1, %p53_p0  ;;  %p2869_p5 = scmp.ge.s32.totalorder %s3750_s14, 1 }
   0xd   : > { %p3826_p6 = por %p106_p3, %p53_p0  ;;  %p113_p7 = scmp.lt.s32.totalorder %s3750_s14, 3 }
   0xe   : > { %s5256_s19 = scalar_select %p3821_p4, 1, 0 }
   0xf   : > { %s5257_s20 = scalar_select %p3826_p6, 1, 0 }
  0x10   : > { %p3831_p8 = pnand %p2869_p5, %p113_p7  ;;  %s3752_s22 = smov [#allocation5]  }
  0x11   : > { %s125_s23 = sshll.u32 %s3752_s22, 4  ;;  %s31_s25 = sadd.s32 1, %s3746_s13  ;;  %s126_s23 = int_to_ptr.vmem [resolvable:$true] %s125_s23 }
  0x12   : > { %s5258_s21 = scalar_select %p3831_p8, 1, 0 }
  0x13   : > { %p3310_p9 = pneg %p3831_p8  ;;  %s3606_s28 = scalar_lea.hbm %s5163_s1, 1024 }
  0x14   : > { %p3607_p12 = scmp.ne.s32.totalorder %s5163_s1, %s3606_s28  ;;  %p3613_p5 = scmp.lt.u32.totalorder %s3606_s28, %s5163_s1 }
  0x15   : > { %p3840_p11 = pnand %p3310_p9, %p3811_p1 }
  0x17   : > { %p3608_p13 = pneg %p3840_p11 }
  0x19   : > { %p3609_p0 = pnand %p3608_p13, %p3607_p12 }
  0x1b   : > { %p3610_p3 = pneg %p3609_p0 }
  0x1d   : > { %p3615_p7 = pnand %p3613_p5, %p3610_p3 }
  0x1f   : > { %3618 = shalt.err (!%p3615_p7)
}
  0x20   : > { %s3619_s5 = scalar_lea.vmem %s126_s23, 1024  ;;  %p3627_p1 = scmp.lt.s32.totalorder %s126_s23, %s126_s23 }
  0x21   : > { %p3620_p9 = scmp.ne.s32.totalorder %s126_s23, %s3619_s5  ;;  %p3628_p4 = scmp.lt.s32.totalorder %s3619_s5, %s3619_s5 }
  0x23   : > { %p3622_p10 = pnand %p3620_p9, %p3608_p13  ;;  %p3629_p8 = por %p3628_p4, %p3627_p1 }
  0x25   : > { %p3623_p6 = pneg %p3622_p10 }
  0x27   : > { %p3630_p2 = pnand %p3629_p8, %p3623_p6 }
  0x29   : > { %3633 = shalt.err (!%p3630_p2)
}
  0x2a   : > { %s3753_s6 = smov 128   ;;  %s3754_s7 = smov 8  }
  0x2b   : > { %3313 = dma.hbm_to_vmem [thread:$0]  (!%p3840_p11), %s5163_s1, 1024, %s126_s23, [#allocation6], %s3753_s6, %s3753_s6, %s3754_s7  }
  0x2c   : > { %p33_p1 = scmp.ge.s32.totalorder %s31_s25, 2  ;;  %s40_s16 = sadd.s32 1, %s3738_s11 }
  0x2d   : > { %p47_p2 = scmp.ne.s32.totalorder %s3738_s11, %s3734_s10  ;;  %p48_p4 = scmp.eq.s32.totalorder %s3750_s14, 0 }
  0x2e   : > { %s5363_s25 = smov (%p33_p1, %s31_s25), 0  ;;  %p5261_p8 = scmp.ne.s32.totalorder %s5255_s18, 0 }
  0x2f   : > { %p3867_p6 = por %p48_p4, %p47_p2  ;;  %s35_s24 = ssub.s32 %s3746_s13, %s5363_s25 }
  0x30   : > { %p3873_p10 = por %p5261_p8, %p47_p2  ;;  %p3323_p12 = scmp.lt.s32.totalorder %s3750_s14, 2 }
  0x31   : > { %p38_p11 = scmp.eq.s32.totalorder %s35_s24, 0  ;;  %s139_s23 = sand.u32 1, %s3738_s11  }
  0x32   : > { %s2872_s27 = sshll.u32 %s139_s23, 8  ;;  %s2916_s29 = sshll.u32 %s3746_s13, 12 }
  0x33   : > { %s3882_s28 = scalar_select %p38_p11, %s3738_s11, %s40_s16  }
  0x34   : > { %s3888_s4 = scalar_lea.hbm %s5162_s0, %s2916_s29  ;;  %s143_s18 = scalar_lea.vmem [#allocation2], %s2872_s27 }
  0x35   : > { %s152_s5 = sshll.u32 %s143_s18, 4  ;;  %p3894_p13 = pnand %p3323_p12, %p3867_p6  ;;  %s3890_s5 = int_to_ptr.vmem [resolvable:$true] %s152_s5 }
  0x36   : > { %s3898_s7 = scalar_lea.sflag [#allocation3], %s139_s23  ;;  %s3634_s8 = scalar_lea.hbm %s3888_s4, 4096 }
  0x37   : > { %p3635_p0 = scmp.ne.s32.totalorder %s3888_s4, %s3634_s8  ;;  %p3636_p3 = pneg %p3894_p13 }
  0x38   : > { %s3639_s22 = scalar_lea.hbm %s5162_s0, 8192  ;;  %p3640_p9 = scmp.lt.u32.totalorder %s3888_s4, %s5162_s0 }
  0x39   : > { %p3637_p5 = pnand %p3636_p3, %p3635_p0  ;;  %p3641_p1 = scmp.lt.u32.totalorder %s3639_s22, %s3634_s8 }
  0x3a   : > { %p3643_p4 = scmp.lt.u32.totalorder %s3634_s8, %s3888_s4 }
  0x3b   : > { %p3638_p7 = pneg %p3637_p5  ;;  %p3642_p2 = por %p3641_p1, %p3640_p9 }
  0x3d   : > { %p3644_p6 = por %p3643_p4, %p3642_p2 }
  0x3f   : > { %p3645_p8 = pnand %p3644_p6, %p3638_p7 }
  0x41   : > { %3648 = shalt.err (!%p3645_p8)
}
  0x42   : > { %s3649_s23 = scalar_lea.vmem %s3890_s5, 4096  ;;  %s3755_s29 = smov [#allocation2]  }
  0x43   : > { %p3650_p12 = scmp.ne.s32.totalorder %s3890_s5, %s3649_s23  ;;  %s3654_s30 = sshll.u32 %s3755_s29, 4  ;;  %s3655_s30 = int_to_ptr.vmem [resolvable:$false] %s3654_s30 }
  0x44   : > { %s3656_s3 = scalar_lea.vmem %s3655_s30, 8192  ;;  %p3657_p5 = scmp.lt.s32.totalorder %s3890_s5, %s3655_s30 }
  0x45   : > { %p3652_p11 = pnand %p3650_p12, %p3636_p3  ;;  %p3658_p9 = scmp.lt.s32.totalorder %s3656_s3, %s3649_s23 }
  0x47   : > { %p3653_p0 = pneg %p3652_p11  ;;  %p3659_p1 = por %p3658_p9, %p3657_p5 }
  0x49   : > { %p3660_p2 = pnand %p3659_p1, %p3653_p0 }
  0x4b   : > { %3663 = shalt.err (!%p3660_p2)
}
  0x4c   : > { %s3756_s18 = smov 512   ;;  %s3757_s8 = smov 32  }
  0x4d   : > { %3317 = dma.hbm_to_vmem [thread:$0]  (!%p3894_p13), %s3888_s4, 4096, %s3890_s5, %s3898_s7, %s3756_s18, %s3756_s18, %s3757_s8  }
  0x4e   : > { %p5264_p3 = scmp.ne.s32.totalorder %s5258_s21, 0 }
  0x50   : > { %164 = sbr.rel (%p5264_p3) target bundleno = 681 (0x2a9), region = 28 }
  0x57   : > { %s3929_s15 = sand.u32 1, %s3734_s10   ;;  %p5265_p7 = scmp.ne.s32.totalorder %s5256_s19, 0 }
  0x58   : > { %s2876_s16 = sshll.u32 %s3929_s15, 8  ;;  %s167_s22 = scalar_lea.sflag [#allocation3], %s3929_s15 }
  0x59   : > { %s3935_s24 = scalar_lea.vmem [#allocation2], %s2876_s16 }
  0x5a   : > { %3717 = dma.done.wait (%p5265_p7), %s167_s22, 4096  }
  0x5b   : > { %3719 = vsyncadd (%p5265_p7), %s167_s22, 4294963200  ;;  %p5266_p13 = scmp.ne.s32.totalorder %s5254_s17, 0 }
  0x5d   : > { %3721 = dma.done.wait (%p5266_p13), [#allocation6], 1024  }
  0x5e   : > { %3723 = vsyncadd (%p5266_p13), [#allocation6], 4294966272  ;;  %v5171_v0 = vmov 0.0   ;;  %v198_v1 = vld [vmem:[%s3935_s24 + $0x8] sm:$0xff]  ;;  %v200_v3 = vld [vmem:[%s3935_s24 + $0x18] sm:$0xff]  ;;  %vm237_vm0 = vcmask 523264  }
  0x5f   : > { %342 = vmatprep.mubr.f32.mxu0 %v5171_v0  ;;  %1332 = vmatprep.mubr.f32.mxu1 %v5171_v0  ;;  %v202_v2 = vld [vmem:[%s3935_s24 + $0x28] sm:$0xff]  ;;  %v262_v4 = vand.u32 4294901760, %v198_v1  ;;  %v204_v6 = vld [vmem:[%s3935_s24 + $0x38] sm:$0xff]  ;;  %v1252_v7 = vand.u32 4294901760, %v200_v3  ;;  %v197_v8 = vld [vmem:[%s3935_s24] sm:$0xff]  ;;  %s4771_s17 = scalar_lea.vmem [#allocation7], %s2876_s16 }
  0x60   : > { %v266_v5 = vand.u32 4294901760, %v202_v2  ;;  %v201_v9 = vld [vmem:[%s3935_s24 + $0x20] sm:$0xff]  ;;  %v1256_v10 = vand.u32 4294901760, %v204_v6  ;;  %v264_v11 = vand.u32 4294901760, %v197_v8  ;;  %v199_v13 = vld [vmem:[%s3935_s24 + $0x10] sm:$0xff]  ;;  %v206_v15 = vld [vmem:[%s3935_s24 + $0x48] sm:$0xff] }
  0x61   : > { %v268_v12 = vand.u32 4294901760, %v201_v9  ;;  %v203_v14 = vld [vmem:[%s3935_s24 + $0x30] sm:$0xff]  ;;  %v3958_v17 = vsub.f32 %v198_v1, %v262_v4  ;;  %v3962_v19 = vsub.f32 %v200_v3, %v1252_v7  ;;  %v210_v20 = vld [vmem:[%s3935_s24 + $0x68] sm:$0xff]  ;;  %v208_v21 = vld [vmem:[%s3935_s24 + $0x58] sm:$0xff]  ;;  %v1254_v29 = vand.u32 4294901760, %v199_v13  ;;  %s2917_s19 = sshll.u32 %s3742_s12, 12 }
  0x62   : > { %v3956_v16 = vpack.c.bf16 %v266_v5, %v262_v4  ;;  %v3960_v18 = vsub.f32 %v202_v2, %v266_v5  ;;  %v212_v22 = vld [vmem:[%s3935_s24 + $0x78] sm:$0xff]  ;;  %v3967_v23 = vpack.c.bf16 %v1256_v10, %v1252_v7  ;;  %v3969_v24 = vsub.f32 %v204_v6, %v1256_v10  ;;  %v205_v27 = vld [vmem:[%s3935_s24 + $0x40] sm:$0xff]  ;;  %v207_v37 = vld [vmem:[%s3935_s24 + $0x50] sm:$0xff]  ;;  %s2770_s21 = sshll.u32 %s4771_s17, 4  ;;  %s5110_s6 = scalar_lea.hbm %s5164_s2, %s2917_s19  ;;  %s5112_s21 = int_to_ptr.vmem [resolvable:$true] %s2770_s21 }
  0x63   : > { %v3971_v25 = vpack.c.bf16 %v268_v12, %v264_v11  ;;  %v3973_v26 = vsub.f32 %v197_v8, %v264_v11  ;;  %v3977_v28 = vsub.f32 %v201_v9, %v268_v12  ;;  %v1258_v30 = vand.u32 4294901760, %v203_v14  ;;  %v209_v32 = vld [vmem:[%s3935_s24 + $0x60] sm:$0xff]  ;;  %v211_v38 = vld [vmem:[%s3935_s24 + $0x70] sm:$0xff]  ;;  %v214_v43 = vld [vmem:[%s3935_s24 + $0x88] sm:$0xff]  ;;  %s2755_s7 = scalar_lea.sflag [#allocation4], %s3929_s15  ;;  %s3664_s12 = scalar_lea.vmem %s5112_s21, 4096 }
  0x64   : > { %2919 = vmatprep.subr.bf16.mxu0 %v3956_v16  ;;  %v270_v31 = vand.u32 4294901760, %v206_v15  ;;  %3015 = vmatprep.subr.bf16.mxu1 %v3967_v23  ;;  %v274_v33 = vand.u32 4294901760, %v210_v20  ;;  %v1260_v34 = vand.u32 4294901760, %v208_v21  ;;  %v1264_v35 = vand.u32 4294901760, %v212_v22  ;;  %v218_v44 = vld [vmem:[%s3935_s24 + $0xa8] sm:$0xff]  ;;  %v216_v45 = vld [vmem:[%s3935_s24 + $0x98] sm:$0xff]  ;;  %p3665_p4 = scmp.ne.s32.totalorder %s5112_s21, %s3664_s12 }
  0x65   : > { %5267 = vst [vmem:[#allocation11_spill] sm:$0xff] %v3971_v25  ;;  %2921 = vmatpush1.bf16.msra.mxu0 %v3971_v25  ;;  %v272_v36 = vand.u32 4294901760, %v205_v27  ;;  %v3984_v39 = vpack.c.bf16 %v1258_v30, %v1254_v29  ;;  %v3986_v40 = vsub.f32 %v199_v13, %v1254_v29  ;;  %v3988_v41 = vsub.f32 %v203_v14, %v1258_v30  ;;  %v220_v50 = vld [vmem:[%s3935_s24 + $0xb8] sm:$0xff]  ;;  %v213_v59 = vld [vmem:[%s3935_s24 + $0x80] sm:$0xff]  ;;  %v215_v2 = vld [vmem:[%s3935_s24 + $0x90] sm:$0xff]  ;;  %s3759_s27 = smov [#allocation7]  }
  0x66   : > { %v3990_v42 = vsub.f32 %v206_v15, %v270_v31  ;;  %v3995_v46 = vpack.c.bf16 %v274_v33, %v270_v31  ;;  %v3997_v47 = vsub.f32 %v210_v20, %v274_v33  ;;  %v3999_v48 = vpack.c.bf16 %v1264_v35, %v1260_v34  ;;  %v217_v60 = vld [vmem:[%s3935_s24 + $0xa0] sm:$0xff]  ;;  %v219_v3 = vld [vmem:[%s3935_s24 + $0xb0] sm:$0xff]  ;;  %v222_v4 = vld [vmem:[%s3935_s24 + $0xc8] sm:$0xff]  ;;  %p3666_p6 = pnand %p3665_p4, %p3873_p10  ;;  %s3668_s23 = sshll.u32 %s3759_s27, 4  ;;  %s3669_s23 = int_to_ptr.vmem [resolvable:$false] %s3668_s23 }
  0x67   : > { %5268 = vst [vmem:[#allocation12_spill] sm:$0xff] %v3984_v39  ;;  %v4001_v49 = vsub.f32 %v208_v21, %v1260_v34  ;;  %3017 = vmatpush1.bf16.msra.mxu1 %v3984_v39  ;;  %v4005_v51 = vsub.f32 %v212_v22, %v1264_v35  ;;  %v276_v52 = vand.u32 4294901760, %v209_v32  ;;  %v4007_v53 = vsub.f32 %v205_v27, %v272_v36  ;;  %v226_v9 = vld [vmem:[%s3935_s24 + $0xe8] sm:$0xff]  ;;  %v224_v10 = vld [vmem:[%s3935_s24 + $0xd8] sm:$0xff]  ;;  %v221_v33 = vld [vmem:[%s3935_s24 + $0xc0] sm:$0xff]  ;;  %s3670_s29 = scalar_lea.vmem %s3669_s23, 8192  ;;  %p3671_p12 = scmp.lt.s32.totalorder %s5112_s21, %s3669_s23 }
  0x68   : > { %5269 = vst [vmem:[#allocation13_spill] sm:$0xff] %v3995_v46  ;;  %5270 = vst [vmem:[#allocation14_spill] sm:$0xff] %v3999_v48  ;;  %v1262_v54 = vand.u32 4294901760, %v207_v37  ;;  %2923 = vmatprep.subr.bf16.mxu0 %v3995_v46  ;;  %3019 = vmatprep.subr.bf16.mxu1 %v3999_v48  ;;  %v1266_v55 = vand.u32 4294901760, %v211_v38  ;;  %v278_v56 = vand.u32 4294901760, %v214_v43  ;;  %v282_v57 = vand.u32 4294901760, %v218_v44  ;;  %p3667_p8 = pneg %p3666_p6  ;;  %p3672_p11 = scmp.lt.s32.totalorder %s3670_s29, %s3664_s12 }
  0x69   : > { %v1268_v58 = vand.u32 4294901760, %v216_v45  ;;  %v4013_v61 = vpack.c.bf16 %v276_v52, %v272_v36  ;;  %v4015_v62 = vsub.f32 %v209_v32, %v276_v52  ;;  %v1272_v1 = vand.u32 4294901760, %v220_v50  ;;  %v228_v11 = vld [vmem:[%s3935_s24 + $0xf8] sm:$0xff] }
  0x6a   : > { %v4017_v63 = vsub.f32 %v207_v37, %v1262_v54  ;;  %v4022_v5 = vpack.c.bf16 %v1266_v55, %v1262_v54  ;;  %v4024_v6 = vsub.f32 %v211_v38, %v1266_v55  ;;  %v4026_v7 = vpack.c.bf16 %v282_v57, %v278_v56  ;;  %v225_v38 = vld [vmem:[%s3935_s24 + $0xe0] sm:$0xff]  ;;  %p3673_p0 = por %p3672_p11, %p3671_p12 }
  0x6b   : > { %5271 = vst [vmem:[#allocation15_spill] sm:$0xff] %v4013_v61  ;;  %v4028_v8 = vsub.f32 %v214_v43, %v278_v56  ;;  %2925 = vmatpush1.bf16.msra.mxu0 %v4013_v61  ;;  %v4034_v12 = vsub.f32 %v218_v44, %v282_v57  ;;  %v4036_v13 = vpack.c.bf16 %v1272_v1, %v1268_v58  ;;  %v280_v20 = vand.u32 4294901760, %v213_v59  ;;  %v223_v43 = vld [vmem:[%s3935_s24 + $0xd0] sm:$0xff]  ;;  %v229_v55 = vld [vmem:[#allocation5] sm:$0xff] }
  0x6c   : > { %5272 = vst [vmem:[#allocation16_spill] sm:$0xff] %v4022_v5  ;;  %5273 = vst [vmem:[#allocation17_spill] sm:$0xff] %v4026_v7  ;;  %v4038_v14 = vsub.f32 %v216_v45, %v1268_v58  ;;  %v4040_v15 = vsub.f32 %v220_v50, %v1272_v1  ;;  %3021 = vmatpush1.bf16.msra.mxu1 %v4022_v5  ;;  %2927 = vmatprep.subr.bf16.mxu0 %v4026_v7  ;;  %v284_v21 = vand.u32 4294901760, %v217_v60  ;;  %v227_v44 = vld [vmem:[%s3935_s24 + $0xf0] sm:$0xff]  ;;  %p3674_p5 = pnand %p3673_p0, %p3667_p8 }
  0x6d   : > { %5274 = vst [vmem:[#allocation18_spill] sm:$0xff] %v4036_v13  ;;  %v1270_v22 = vand.u32 4294901760, %v215_v2  ;;  %v1274_v27 = vand.u32 4294901760, %v219_v3  ;;  %3023 = vmatprep.subr.bf16.mxu1 %v4036_v13  ;;  %v286_v29 = vand.u32 4294901760, %v222_v4  ;;  %v290_v30 = vand.u32 4294901760, %v226_v9 }
  0x6e   : > { %v1276_v31 = vand.u32 4294901760, %v224_v10  ;;  %v1280_v32 = vand.u32 4294901760, %v228_v11  ;;  %v4046_v34 = vpack.c.bf16 %v284_v21, %v280_v20  ;;  %v4048_v35 = vsub.f32 %v213_v59, %v280_v20 }
  0x6f   : > { %v4050_v36 = vsub.f32 %v217_v60, %v284_v21  ;;  %v4052_v37 = vpack.c.bf16 %v1274_v27, %v1270_v22  ;;  %v4057_v45 = vsub.f32 %v215_v2, %v1270_v22  ;;  %v4059_v50 = vsub.f32 %v219_v3, %v1274_v27 }
  0x70   : > { %5275 = vst [vmem:[#allocation19_spill] sm:$0xff] %v4046_v34  ;;  %v4061_v52 = vpack.c.bf16 %v290_v30, %v286_v29  ;;  %v4063_v54 = vsub.f32 %v222_v4, %v286_v29  ;;  %2929 = vmatpush1.bf16.msra.mxu0 %v4046_v34  ;;  %v4067_v56 = vsub.f32 %v226_v9, %v290_v30  ;;  %v288_v59 = vand.u32 4294901760, %v221_v33 }
  0x71   : > { %5276 = vst [vmem:[#allocation20_spill] sm:$0xff] %v4052_v37  ;;  %3025 = vmatpush1.bf16.msra.mxu1 %v4052_v37  ;;  %v4069_v57 = vpack.c.bf16 %v1280_v32, %v1276_v31  ;;  %v4071_v58 = vsub.f32 %v224_v10, %v1276_v31  ;;  %v4074_v60 = vsub.f32 %v228_v11, %v1280_v32  ;;  %v292_v1 = vand.u32 4294901760, %v225_v38 }
  0x72   : > { %5277 = vst [vmem:[#allocation21_spill] sm:$0xff] %v4061_v52  ;;  %2931 = vmatprep.subr.bf16.mxu0 %v4061_v52  ;;  %v1278_v2 = vand.u32 4294901760, %v223_v43  ;;  %v1282_v3 = vand.u32 4294901760, %v227_v44  ;;  %v4077_v4 = vsub.f32 %v221_v33, %v288_v59  ;;  %v239_v20 = vsel %vm237_vm0, %v229_v55, 0 }
  0x73   : > { %5278 = vst [vmem:[#allocation22_spill] sm:$0xff] %v4069_v57  ;;  %3027 = vmatprep.subr.bf16.mxu1 %v4069_v57  ;;  %v5170_v9 = vand.u32 4294901760, %v3958_v17  ;;  %v5169_v21 = vand.u32 4294901760, %v3960_v18  ;;  %v4082_v10 = vpack.c.bf16 %v292_v1, %v288_v59  ;;  %v4084_v22 = vsub.f32 %v225_v38, %v292_v1 }
  0x74   : > { %v4086_v27 = vpack.c.bf16 %v1282_v3, %v1278_v2  ;;  %v4088_v11 = vsub.f32 %v223_v43, %v1278_v2  ;;  %v4090_v29 = vsub.f32 %v227_v44, %v1282_v3  ;;  %v4092_v30 = vand.u32 4294901760, %v239_v20 }
  0x75   : > { %5279 = vst [vmem:[#allocation23_spill] sm:$0xff] %v4082_v10  ;;  %v434_v31 = vsub.f32 %v3958_v17, %v5170_v9  ;;  %v446_v32 = vsub.f32 %v3960_v18, %v5169_v21  ;;  %2933 = vmatpush1.bf16.msra.mxu0 %v4082_v10  ;;  %v5173_v33 = vand.u32 4294901760, %v3962_v19  ;;  %v5176_v38 = vand.u32 4294901760, %v3969_v24 }
  0x76   : > { %5280 = vst [vmem:[#allocation24_spill] sm:$0xff] %v4086_v27  ;;  %3029 = vmatpush1.bf16.msra.mxu1 %v4086_v27  ;;  %v5183_v43 = vand.u32 4294901760, %v3973_v26  ;;  %v5186_v44 = vand.u32 4294901760, %v3977_v28  ;;  %v4107_v55 = vsub.f32 %v239_v20, %v4092_v30  ;;  %v5189_v2 = vand.u32 4294901760, %v3986_v40 }
  0x77   : > { %v435_v59 = vand.u32 4294901760, %v434_v31  ;;  %v447_v1 = vand.u32 4294901760, %v446_v32  ;;  %v1424_v3 = vsub.f32 %v3962_v19, %v5173_v33  ;;  %v1436_v21 = vsub.f32 %v3969_v24, %v5176_v38  ;;  %v230_v31 = vld [vmem:[#allocation5 + $0x8] sm:$0xff]  ;;  %v231_v38 = vld [vmem:[#allocation5 + $0x10] sm:$0xff] }
  0x78   : > { %v440_v9 = vsub.f32 %v3973_v26, %v5183_v43  ;;  %v452_v20 = vsub.f32 %v3977_v28, %v5186_v44  ;;  %v4123_v32 = vand.u32 4294901760, %v4107_v55  ;;  %v1430_v33 = vsub.f32 %v3986_v40, %v5189_v2 }
  0x79   : > { %v2934_v0 = vpack.c.bf16 %v447_v1, %v435_v59  ;;  %v5197_v27 = vand.u32 4294901760, %v3988_v41  ;;  %v1425_v10 = vand.u32 4294901760, %v1424_v3  ;;  %v1437_v57 = vand.u32 4294901760, %v1436_v21 }
  0x7a   : > { %5281 = vst [vmem:[#allocation25_spill] sm:$0xff] %v4123_v32  ;;  %v441_v52 = vand.u32 4294901760, %v440_v9  ;;  %v453_v43 = vand.u32 4294901760, %v452_v20  ;;  %v346_v37 = vsub.f32 %v4107_v55, %v4123_v32  ;;  %v1431_v44 = vand.u32 4294901760, %v1430_v33 }
  0x7b   : > { %2935 = vmatprep.subr.bf16.mxu0 %v2934_v0  ;;  %v1442_v59 = vsub.f32 %v3988_v41, %v5197_v27  ;;  %v242_v1 = vsel %vm237_vm0, %v230_v31, 0  ;;  %v3030_v34 = vpack.c.bf16 %v1437_v57, %v1425_v10  ;;  %v245_v3 = vsel %vm237_vm0, %v231_v38, 0 }
  0x7c   : > { %v2936_v2 = vpack.c.bf16 %v453_v43, %v441_v52  ;;  %v4135_v13 = vand.u32 4294901760, %v242_v1  ;;  %v347_v21 = vand.u32 4294901760, %v346_v37  ;;  %v4138_v20 = vand.u32 4294901760, %v245_v3 }
  0x7d   : > { %v1443_v9 = vand.u32 4294901760, %v1442_v59  ;;  %v5196_v32 = vand.u32 4294901760, %v3990_v42  ;;  %3031 = vmatprep.subr.bf16.mxu1 %v3030_v34  ;;  %v5195_v33 = vand.u32 4294901760, %v3997_v47  ;;  %v5194_v31 = vand.u32 4294901760, %v4001_v49 }
  0x7e   : > { %v4142_v0 = vsub.f32 %v242_v1, %v4135_v13  ;;  %v5198_v52 = vand.u32 4294901760, %v4005_v51  ;;  %348 = vmatmul.mubr.f32.vlgmr.msra.gmra.mrb[0].mxu0 %v347_v21  ;;  %1338 = vmatmul.mubr.f32.vlgmr.msra.gmra.mrb[0].mxu1 %v347_v21  ;;  %v4148_v37 = vsub.f32 %v245_v3, %v4138_v20  ;;  %v5203_v34 = vand.u32 4294901760, %v4007_v53 }
  0x7f   : > { %v3032_v57 = vpack.c.bf16 %v1443_v9, %v1431_v44  ;;  %v458_v10 = vsub.f32 %v3990_v42, %v5196_v32  ;;  %2937 = vmatpush1.bf16.msra.mxu0 %v2936_v2  ;;  %v5284_v38 = vmov 0.0   ;;  %v470_v59 = vsub.f32 %v3997_v47, %v5195_v33 }
  0x80   : > { %5282 = vst [vmem:[#allocation26_spill] sm:$0xff] %v4142_v0  ;;  %5283 = vst [vmem:[#allocation27_spill] sm:$0xff] %v4148_v37  ;;  %353 = vmatprep.mubr.f32.mxu0 %v5284_v38  ;;  %v4156_v43 = vand.u32 4294901760, %v4142_v0  ;;  %v1448_v44 = vsub.f32 %v4001_v49, %v5194_v31  ;;  %v1460_v1 = vsub.f32 %v4005_v51, %v5198_v52  ;;  %1343 = vmatprep.mubr.f32.mxu1 %v5284_v38  ;;  %v232_v52 = vld [vmem:[#allocation5 + $0x18] sm:$0xff] }
  0x81   : > { %3033 = vmatpush1.bf16.msra.mxu1 %v3032_v57  ;;  %v4169_v2 = vand.u32 4294901760, %v4148_v37  ;;  %v459_v3 = vand.u32 4294901760, %v458_v10  ;;  %v464_v21 = vsub.f32 %v4007_v53, %v5203_v34  ;;  %v5212_v9 = vand.u32 4294901760, %v4015_v62  ;;  %v233_v34 = vld [vmem:[#allocation5 + $0x20] sm:$0xff] }
  0x82   : > { %5285 = vst [vmem:[#allocation28_spill] sm:$0xff] %v4156_v43  ;;  %v357_v31 = vsub.f32 %v4142_v0, %v4156_v43  ;;  %v471_v33 = vand.u32 4294901760, %v470_v59  ;;  %v1449_v32 = vand.u32 4294901760, %v1448_v44  ;;  %v1461_v27 = vand.u32 4294901760, %v1460_v1 }
  0x83   : > { %5286 = vst [vmem:[#allocation29_spill] sm:$0xff] %v4169_v2  ;;  %v368_v57 = vsub.f32 %v4148_v37, %v4169_v2  ;;  %v465_v7 = vand.u32 4294901760, %v464_v21  ;;  %v476_v10 = vsub.f32 %v4015_v62, %v5212_v9  ;;  %v5219_v5 = vand.u32 4294901760, %v4017_v63 }
  0x84   : > { %v358_v61 = vand.u32 4294901760, %v357_v31  ;;  %v2938_v48 = vpack.c.bf16 %v471_v33, %v459_v3  ;;  %v3034_v46 = vpack.c.bf16 %v1461_v27, %v1449_v32  ;;  %v5218_v43 = vand.u32 4294901760, %v4024_v6 }
  0x85   : > { %v369_v59 = vand.u32 4294901760, %v368_v57  ;;  %v477_v44 = vand.u32 4294901760, %v476_v10  ;;  %v1454_v1 = vsub.f32 %v4017_v63, %v5219_v5  ;;  %v248_v21 = vsel %vm237_vm0, %v232_v52, 0  ;;  %v235_v5 = vld [vmem:[#allocation5 + $0x30] sm:$0xff] }
  0x86   : > { %359 = vmatmul.mubr.f32.gmra.mrb[2].mxu0 %v358_v61  ;;  %1349 = vmatmul.mubr.f32.gmra.mrb[2].mxu1 %v358_v61  ;;  %v1466_v9 = vsub.f32 %v4024_v6, %v5218_v43  ;;  %v4191_v2 = vand.u32 4294901760, %v248_v21  ;;  %v251_v27 = vsel %vm237_vm0, %v233_v34, 0  ;;  %v5217_v32 = vand.u32 4294901760, %v4028_v8  ;;  %v234_v43 = vld [vmem:[#allocation5 + $0x28] sm:$0xff] }
  0x87   : > { %364 = vmatprep.mubr.f32.mxu0 %v5284_v38  ;;  %1354 = vmatprep.mubr.f32.mxu1 %v5284_v38  ;;  %v2940_v33 = vpack.c.bf16 %v477_v44, %v465_v7  ;;  %v1455_v31 = vand.u32 4294901760, %v1454_v1  ;;  %v4197_v3 = vand.u32 4294901760, %v251_v27  ;;  %v5215_v61 = vand.u32 4294901760, %v4034_v12 }
  0x88   : > { %2939 = vmatprep.subr.bf16.mxu0 %v2938_v48  ;;  %3035 = vmatprep.subr.bf16.mxu1 %v3034_v46  ;;  %v1467_v52 = vand.u32 4294901760, %v1466_v9  ;;  %v4201_v57 = vsub.f32 %v248_v21, %v4191_v2  ;;  %v482_v34 = vsub.f32 %v4028_v8, %v5217_v32  ;;  %v5216_v10 = vand.u32 4294901760, %v4038_v14 }
  0x89   : > { %2941 = vmatpush1.bf16.msra.mxu0 %v2940_v33  ;;  %v4208_v7 = vsub.f32 %v251_v27, %v4197_v3  ;;  %v494_v44 = vsub.f32 %v4034_v12, %v5215_v61  ;;  %v5222_v46 = vand.u32 4294901760, %v4040_v15  ;;  %v5227_v48 = vand.u32 4294901760, %v4048_v35 }
  0x8a   : > { %5287 = vst [vmem:[#allocation30_spill] sm:$0xff] %v4201_v57  ;;  %370 = vmatmul.mubr.f32.gmra.mrb[4].mxu0 %v369_v59  ;;  %1360 = vmatmul.mubr.f32.gmra.mrb[4].mxu1 %v369_v59  ;;  %v3036_v9 = vpack.c.bf16 %v1467_v52, %v1455_v31  ;;  %v4216_v1 = vand.u32 4294901760, %v4201_v57  ;;  %v483_v21 = vand.u32 4294901760, %v482_v34  ;;  %v1472_v27 = vsub.f32 %v4038_v14, %v5216_v10 }
  0x8b   : > { %5288 = vst [vmem:[#allocation31_spill] sm:$0xff] %v4208_v7  ;;  %375 = vmatprep.mubr.f32.mxu0 %v5284_v38  ;;  %1365 = vmatprep.mubr.f32.mxu1 %v5284_v38  ;;  %v4224_v33 = vand.u32 4294901760, %v4208_v7  ;;  %v495_v61 = vand.u32 4294901760, %v494_v44  ;;  %v1484_v59 = vsub.f32 %v4040_v15, %v5222_v46  ;;  %v488_v31 = vsub.f32 %v4048_v35, %v5227_v48 }
  0x8c   : > { %5289 = vst [vmem:[#allocation32_spill] sm:$0xff] %v4216_v1  ;;  %3037 = vmatpush1.bf16.msra.mxu1 %v3036_v9  ;;  %v379_v52 = vsub.f32 %v4201_v57, %v4216_v1  ;;  %v1473_v34 = vand.u32 4294901760, %v1472_v27  ;;  %v5240_v10 = vand.u32 4294901760, %v4050_v36  ;;  %v5235_v32 = vand.u32 4294901760, %v4057_v45 }
  0x8d   : > { %5290 = vst [vmem:[#allocation33_spill] sm:$0xff] %v4224_v33  ;;  %v390_v44 = vsub.f32 %v4208_v7, %v4224_v33  ;;  %v2942_v37 = vpack.c.bf16 %v495_v61, %v483_v21  ;;  %v1485_v46 = vand.u32 4294901760, %v1484_v59  ;;  %v489_v0 = vand.u32 4294901760, %v488_v31 }
  0x8e   : > { %v380_v39 = vand.u32 4294901760, %v379_v52  ;;  %v500_v9 = vsub.f32 %v4050_v36, %v5240_v10  ;;  %v1478_v27 = vsub.f32 %v4057_v45, %v5235_v32  ;;  %v5234_v48 = vand.u32 4294901760, %v4059_v50 }
  0x8f   : > { %v391_v1 = vand.u32 4294901760, %v390_v44  ;;  %2943 = vmatprep.subr.bf16.mxu0 %v2942_v37  ;;  %v3038_v57 = vpack.c.bf16 %v1485_v46, %v1473_v34  ;;  %v254_v25 = vsel %vm237_vm0, %v234_v43, 0  ;;  %v257_v61 = vsel %vm237_vm0, %v235_v5, 0 }
  0x90   : > { %381 = vmatmul.mubr.f32.gmra.mrb[6].mxu0 %v380_v39  ;;  %1371 = vmatmul.mubr.f32.gmra.mrb[6].mxu1 %v380_v39  ;;  %v501_v21 = vand.u32 4294901760, %v500_v9  ;;  %v1479_v59 = vand.u32 4294901760, %v1478_v27  ;;  %v1490_v31 = vsub.f32 %v4059_v50, %v5234_v48  ;;  %v4250_v52 = vand.u32 4294901760, %v254_v25 }
  0x91   : > { %386 = vmatprep.mubr.f32.mxu0 %v5284_v38  ;;  %1376 = vmatprep.mubr.f32.mxu1 %v5284_v38  ;;  %v4254_v37 = vand.u32 4294901760, %v257_v61  ;;  %v5238_v43 = vand.u32 4294901760, %v4063_v54  ;;  %v5236_v5 = vand.u32 4294901760, %v4067_v56  ;;  %v5237_v39 = vand.u32 4294901760, %v4071_v58 }
  0x92   : > { %3039 = vmatprep.subr.bf16.mxu1 %v3038_v57  ;;  %v2944_v46 = vpack.c.bf16 %v501_v21, %v489_v0  ;;  %v1491_v34 = vand.u32 4294901760, %v1490_v31  ;;  %v4260_v44 = vsub.f32 %v254_v25, %v4250_v52  ;;  %v5239_v9 = vand.u32 4294901760, %v4074_v60 }
  0x93   : > { %v4264_v27 = vsub.f32 %v257_v61, %v4254_v37  ;;  %v506_v48 = vsub.f32 %v4063_v54, %v5238_v43  ;;  %v518_v32 = vsub.f32 %v4067_v56, %v5236_v5  ;;  %v1496_v0 = vsub.f32 %v4071_v58, %v5237_v39 }
  0x94   : > { %5291 = vst [vmem:[#allocation34_spill] sm:$0xff] %v4260_v44  ;;  %392 = vmatmul.mubr.f32.gmra.mrb[8].mxu0 %v391_v1  ;;  %1382 = vmatmul.mubr.f32.gmra.mrb[8].mxu1 %v391_v1  ;;  %v3040_v25 = vpack.c.bf16 %v1491_v34, %v1479_v59  ;;  %v4276_v57 = vand.u32 4294901760, %v4260_v44  ;;  %v1508_v61 = vsub.f32 %v4074_v60, %v5239_v9  ;;  %v5247_v21 = vand.u32 4294901760, %v4077_v4  ;;  %v236_v9 = vld [vmem:[#allocation5 + $0x38] sm:$0xff] }
  0x95   : > { %2945 = vmatpush1.bf16.msra.mxu0 %v2944_v46  ;;  %397 = vmatprep.mubr.f32.mxu0 %v5284_v38  ;;  %v4284_v31 = vand.u32 4294901760, %v4264_v27  ;;  %v507_v5 = vand.u32 4294901760, %v506_v48  ;;  %v519_v39 = vand.u32 4294901760, %v518_v32  ;;  %v1497_v43 = vand.u32 4294901760, %v1496_v0 }
  0x96   : > { %5292 = vst [vmem:[#allocation35_spill] sm:$0xff] %v4276_v57  ;;  %3041 = vmatpush1.bf16.msra.mxu1 %v3040_v25  ;;  %1387 = vmatprep.mubr.f32.mxu1 %v5284_v38  ;;  %v401_v1 = vsub.f32 %v4260_v44, %v4276_v57  ;;  %v1509_v59 = vand.u32 4294901760, %v1508_v61  ;;  %v512_v34 = vsub.f32 %v4077_v4, %v5247_v21  ;;  %v523_v46 = vand.u32 4294901760, %v4084_v22 }
  0x97   : > { %5293 = vst [vmem:[#allocation36_spill] sm:$0xff] %v4284_v31  ;;  %v412_v10 = vsub.f32 %v4264_v27, %v4284_v31  ;;  %v2946_v48 = vpack.c.bf16 %v519_v39, %v507_v5  ;;  %v1501_v32 = vand.u32 4294901760, %v4088_v11  ;;  %v1513_v0 = vand.u32 4294901760, %v4090_v29 }
  0x98   : > { %v402_v25 = vand.u32 4294901760, %v401_v1  ;;  %v3042_v33 = vpack.c.bf16 %v1509_v59, %v1497_v43  ;;  %v513_v7 = vand.u32 4294901760, %v512_v34  ;;  %v524_v61 = vsub.f32 %v4084_v22, %v523_v46 }
  0x99   : > { %2947 = vmatprep.subr.bf16.mxu0 %v2946_v48  ;;  %v1502_v57 = vsub.f32 %v4088_v11, %v1501_v32  ;;  %v1514_v21 = vsub.f32 %v4090_v29, %v1513_v0  ;;  %v260_v44 = vsel %vm237_vm0, %v236_v9, 0  ;;  %v413_v31 = vand.u32 4294901760, %v412_v10 }
  0x9a   : > { %403 = vmatmul.mubr.f32.gmra.mrb[10].mxu0 %v402_v25  ;;  %1393 = vmatmul.mubr.f32.gmra.mrb[10].mxu1 %v402_v25  ;;  %v525_v5 = vand.u32 4294901760, %v524_v61  ;;  %v4301_v39 = vand.u32 4294901760, %v260_v44  ;;  %v2950_v9 = vpack.c.bf16 %v3960_v18, %v3958_v17  ;;  %v3046_v10 = vpack.c.bf16 %v3969_v24, %v3962_v19 }
  0x9b   : > { %408 = vmatprep.mubr.f32.mxu0 %v5284_v38  ;;  %1398 = vmatprep.mubr.f32.mxu1 %v5284_v38  ;;  %v1503_v43 = vand.u32 4294901760, %v1502_v57  ;;  %v1515_v1 = vand.u32 4294901760, %v1514_v21  ;;  %v5296_v57 = vand.u32 4294901760, %v3960_v18  ;;  %v5298_v61 = vand.u32 4294901760, %v3969_v24 }
  0x9c   : > { %3043 = vmatprep.subr.bf16.mxu1 %v3042_v33  ;;  %v2948_v59 = vpack.c.bf16 %v525_v5, %v513_v7  ;;  %v4306_v34 = vsub.f32 %v260_v44, %v4301_v39  ;;  %v2952_v33 = vpack.c.bf16 %v3977_v28, %v3973_v26  ;;  %v5295_v44 = vand.u32 4294901760, %v3958_v17 }
  0x9d   : > { %v3044_v48 = vpack.c.bf16 %v1515_v1, %v1503_v43  ;;  %v5299_v43 = vand.u32 4294901760, %v3973_v26  ;;  %v5300_v1 = vand.u32 4294901760, %v3977_v28  ;;  %v5301_v17 = vand.u32 4294901760, %v3986_v40 }
  0x9e   : > { %414 = vmatmul.mubr.f32.gmra.mrb[12].mxu0 %v413_v31  ;;  %1404 = vmatmul.mubr.f32.gmra.mrb[12].mxu1 %v413_v31  ;;  %v4313_v25 = vand.u32 4294901760, %v4306_v34  ;;  %v4325_v21 = vpack.c.bf16 %v5296_v57, %v5295_v44  ;;  %v5297_v31 = vand.u32 4294901760, %v3962_v19  ;;  %v5302_v18 = vand.u32 4294901760, %v3988_v41 }
  0x9f   : > { %2949 = vmatpush1.bf16.msra.mxu0 %v2948_v59  ;;  %3045 = vmatpush1.bf16.msra.mxu1 %v3044_v48  ;;  %v4337_v59 = vpack.c.bf16 %v5300_v1, %v5299_v43  ;;  %v5304_v19 = vand.u32 4294901760, %v3997_v47  ;;  %v5305_v44 = vand.u32 4294901760, %v4001_v49  ;;  %v5306_v26 = vand.u32 4294901760, %v4005_v51 }
  0xa0   : > { %5294 = vst [vmem:[#allocation37_spill] sm:$0xff] %v4313_v25  ;;  %419 = vmatprep.mubr.f32.mxu0 %v5284_v38  ;;  %1409 = vmatprep.mubr.f32.mxu1 %v5284_v38  ;;  %v423_v7 = vsub.f32 %v4306_v34, %v4313_v25  ;;  %v4331_v5 = vpack.c.bf16 %v5298_v61, %v5297_v31  ;;  %v5307_v57 = vand.u32 4294901760, %v4007_v53  ;;  %v5308_v31 = vand.u32 4294901760, %v4015_v62 }
  0xa1   : > { %2951 = vmatprep.subr.bf16.mxu0 %v2950_v9  ;;  %3047 = vmatprep.subr.bf16.mxu1 %v3046_v10  ;;  %v4343_v48 = vpack.c.bf16 %v5302_v18, %v5301_v17  ;;  %v5303_v10 = vand.u32 4294901760, %v3990_v42  ;;  %v4355_v28 = vpack.c.bf16 %v5306_v26, %v5305_v44  ;;  %v5310_v43 = vand.u32 4294901760, %v4024_v6 }
  0xa2   : > { %v424_v9 = vand.u32 4294901760, %v423_v7  ;;  %v4361_v61 = vpack.c.bf16 %v5308_v31, %v5307_v57  ;;  %v5309_v7 = vand.u32 4294901760, %v4017_v63  ;;  %v5311_v17 = vand.u32 4294901760, %v4028_v8 }
  0xa3   : > { %v4349_v24 = vpack.c.bf16 %v5304_v19, %v5303_v10  ;;  %v5312_v18 = vand.u32 4294901760, %v4034_v12  ;;  %v5314_v19 = vand.u32 4294901760, %v4038_v14  ;;  %v5315_v44 = vand.u32 4294901760, %v4040_v15 }
  0xa4   : > { %v4367_v1 = vpack.c.bf16 %v5310_v43, %v5309_v7  ;;  %v5317_v57 = vand.u32 4294901760, %v4048_v35  ;;  %v5318_v31 = vand.u32 4294901760, %v4050_v36  ;;  %425 = vmatmul.mubr.f32.gmra.mrb[14].mxu0 %v424_v9  ;;  %1415 = vmatmul.mubr.f32.gmra.mrb[14].mxu1 %v424_v9  ;;  %v5319_v7 = vand.u32 4294901760, %v4057_v45 }
  0xa5   : > { %v4373_v10 = vpack.c.bf16 %v5312_v18, %v5311_v17  ;;  %v4379_v26 = vpack.c.bf16 %v5315_v44, %v5314_v19  ;;  %v5320_v43 = vand.u32 4294901760, %v4059_v50  ;;  %v5321_v18 = vand.u32 4294901760, %v4063_v54  ;;  %575 = vmatprep.mubr.f32.mxu0 %v5284_v38  ;;  %1565 = vmatprep.mubr.f32.mxu1 %v5284_v38 }
  0xa6   : > { %v4385_v25 = vpack.c.bf16 %v5318_v31, %v5317_v57  ;;  %v5323_v44 = vand.u32 4294901760, %v4071_v58  ;;  %v3048_v9 = vpack.c.bf16 %v3988_v41, %v3986_v40  ;;  %v5325_v31 = vand.u32 4294901760, %v4077_v4 }
  0xa7   : > { %5313 = vst [vmem:[#allocation38_spill] sm:$0xff] %v4373_v10  ;;  %5316 = vst [vmem:[#allocation39_spill] sm:$0xff] %v4379_v26  ;;  %v4391_v17 = vpack.c.bf16 %v5320_v43, %v5319_v7  ;;  %v5322_v10 = vand.u32 4294901760, %v4067_v56  ;;  %v5324_v26 = vand.u32 4294901760, %v4074_v60  ;;  %v4413_v43 = vpack.c.bf16 %v1513_v0, %v1501_v32  ;;  %v5344_v32 = vld [vmem:[#allocation34_spill] sm:$0xff]  ;;  %v5345_v0 = vld [vmem:[#allocation25_spill] sm:$0xff] }
  0xa8   : > { %v4411_v7 = vpack.c.bf16 %v523_v46, %v5325_v31  ;;  %577 = vmatmul.mubr.f32.vlgmr.msra.gmra.mrb[0].mxu0 %v4092_v30  ;;  %1567 = vmatmul.mubr.f32.vlgmr.msra.gmra.mrb[0].mxu1 %v4092_v30  ;;  %v2956_v40 = vpack.c.bf16 %v4015_v62, %v4007_v53  ;;  %v3052_v41 = vpack.c.bf16 %v4024_v6, %v4017_v63  ;;  %v5343_v46 = vld [vmem:[#allocation31_spill] sm:$0xff] }
  0xa9   : > { %v4397_v19 = vpack.c.bf16 %v5322_v10, %v5321_v18  ;;  %v4403_v57 = vpack.c.bf16 %v5324_v26, %v5323_v44  ;;  %v2954_v10 = vpack.c.bf16 %v3997_v47, %v3990_v42  ;;  %v3050_v26 = vpack.c.bf16 %v4005_v51, %v4001_v49  ;;  %2953 = vmatpush1.bf16.msra.mxu0 %v2952_v33 }
  0xaa   : > { %3049 = vmatpush1.bf16.msra.mxu1 %v3048_v9  ;;  %582 = vmatprep.mubr.f32.mxu0 %v5284_v38  ;;  %v2958_v42 = vpack.c.bf16 %v4034_v12, %v4028_v8  ;;  %v3054_v47 = vpack.c.bf16 %v4040_v15, %v4038_v14  ;;  %v2960_v49 = vpack.c.bf16 %v4050_v36, %v4048_v35  ;;  %v5326_v8 = vld [vmem:[#allocation11_spill] sm:$0xff]  ;;  %v5327_v12 = vld [vmem:[#allocation12_spill] sm:$0xff]  ;;  %v5328_v14 = vld [vmem:[#allocation13_spill] sm:$0xff] }
  0xab   : > { %1572 = vmatprep.mubr.f32.mxu1 %v5284_v38  ;;  %2955 = vmatprep.subr.bf16.mxu0 %v2954_v10  ;;  %v3056_v51 = vpack.c.bf16 %v4059_v50, %v4057_v45  ;;  %v2962_v53 = vpack.c.bf16 %v4067_v56, %v4063_v54  ;;  %v3058_v62 = vpack.c.bf16 %v4074_v60, %v4071_v58  ;;  %v5329_v15 = vld [vmem:[#allocation14_spill] sm:$0xff]  ;;  %v5331_v36 = vld [vmem:[#allocation15_spill] sm:$0xff]  ;;  %v5332_v45 = vld [vmem:[#allocation16_spill] sm:$0xff] }
  0xac   : > { %3051 = vmatprep.subr.bf16.mxu1 %v3050_v26  ;;  %584 = vmatmul.mubr.f32.gmra.mrb[2].mxu0 %v4135_v13  ;;  %v2964_v63 = vpack.c.bf16 %v4084_v22, %v4077_v4  ;;  %v3060_v6 = vpack.c.bf16 %v4090_v29, %v4088_v11  ;;  %v5330_v35 = vld [vmem:[#allocation26_spill] sm:$0xff]  ;;  %v5333_v50 = vld [vmem:[#allocation17_spill] sm:$0xff]  ;;  %v5335_v56 = vld [vmem:[#allocation27_spill] sm:$0xff] }
  0xad   : > { %1574 = vmatmul.mubr.f32.gmra.mrb[2].mxu1 %v4135_v13  ;;  %589 = vmatprep.mubr.f32.mxu0 %v5284_v38  ;;  %v5334_v54 = vld [vmem:[#allocation18_spill] sm:$0xff]  ;;  %v5336_v58 = vld [vmem:[#allocation19_spill] sm:$0xff]  ;;  %v5337_v60 = vld [vmem:[#allocation20_spill] sm:$0xff] }
  0xae   : > { %1579 = vmatprep.mubr.f32.mxu1 %v5284_v38  ;;  %2957 = vmatpush1.bf16.msra.mxu0 %v2956_v40  ;;  %v5338_v4 = vld [vmem:[#allocation21_spill] sm:$0xff]  ;;  %v5339_v22 = vld [vmem:[#allocation22_spill] sm:$0xff]  ;;  %v5341_v29 = vld [vmem:[#allocation23_spill] sm:$0xff] }
  0xaf   : > { %3053 = vmatpush1.bf16.msra.mxu1 %v3052_v41  ;;  %2959 = vmatprep.subr.bf16.mxu0 %v2958_v42  ;;  %v5340_v11 = vld [vmem:[#allocation30_spill] sm:$0xff]  ;;  %v5348_v33 = vld [vmem:[#allocation39_spill] sm:$0xff] }
  0xb0   : > { %3055 = vmatprep.subr.bf16.mxu1 %v3054_v47  ;;  %591 = vmatmul.mubr.f32.gmra.mrb[4].mxu0 %v4138_v20 }
  0xb1   : > { %1581 = vmatmul.mubr.f32.gmra.mrb[4].mxu1 %v4138_v20  ;;  %596 = vmatprep.mubr.f32.mxu0 %v5284_v38 }
  0xb2   : > { %1586 = vmatprep.mubr.f32.mxu1 %v5284_v38  ;;  %2961 = vmatpush1.bf16.msra.mxu0 %v2960_v49 }
  0xb3   : > { %3057 = vmatpush1.bf16.msra.mxu1 %v3056_v51  ;;  %2963 = vmatprep.subr.bf16.mxu0 %v2962_v53 }
  0xb4   : > { %3059 = vmatprep.subr.bf16.mxu1 %v3058_v62  ;;  %598 = vmatmul.mubr.f32.gmra.mrb[6].mxu0 %v4191_v2 }
  0xb5   : > { %1588 = vmatmul.mubr.f32.gmra.mrb[6].mxu1 %v4191_v2  ;;  %603 = vmatprep.mubr.f32.mxu0 %v5284_v38 }
  0xb6   : > { %1593 = vmatprep.mubr.f32.mxu1 %v5284_v38  ;;  %2965 = vmatpush1.bf16.msra.mxu0 %v2964_v63 }
  0xb7   : > { %3061 = vmatpush1.bf16.msra.mxu1 %v3060_v6  ;;  %2967 = vmatprep.subr.bf16.mxu0 %v3956_v16 }
  0xb8   : > { %3063 = vmatprep.subr.bf16.mxu1 %v3967_v23  ;;  %605 = vmatmul.mubr.f32.gmra.mrb[8].mxu0 %v4197_v3 }
  0xb9   : > { %1595 = vmatmul.mubr.f32.gmra.mrb[8].mxu1 %v4197_v3  ;;  %610 = vmatprep.mubr.f32.mxu0 %v5284_v38 }
  0xba   : > { %1600 = vmatprep.mubr.f32.mxu1 %v5284_v38 }
  0xbc   : > { %612 = vmatmul.mubr.f32.gmra.mrb[10].mxu0 %v4250_v52 }
  0xbd   : > { %1602 = vmatmul.mubr.f32.gmra.mrb[10].mxu1 %v4250_v52  ;;  %617 = vmatprep.mubr.f32.mxu0 %v5284_v38 }
  0xbe   : > { %1607 = vmatprep.mubr.f32.mxu1 %v5284_v38 }
  0xc0   : > { %619 = vmatmul.mubr.f32.gmra.mrb[12].mxu0 %v4254_v37 }
  0xc1   : > { %1609 = vmatmul.mubr.f32.gmra.mrb[12].mxu1 %v4254_v37  ;;  %624 = vmatprep.mubr.f32.mxu0 %v5284_v38 }
  0xc2   : > { %1614 = vmatprep.mubr.f32.mxu1 %v5284_v38 }
  0xc4   : > { %626 = vmatmul.mubr.f32.gmra.mrb[14].mxu0 %v4301_v39 }
  0xc5   : > { %1616 = vmatmul.mubr.f32.gmra.mrb[14].mxu1 %v4301_v39  ;;  %728 = vmatprep.mubr.f32.mxu0 %v5284_v38 }
  0xc6   : > { %1718 = vmatprep.mubr.f32.mxu1 %v5284_v38 }
  0xc8   : > { %731 = vmatmul.mubr.f32.vlgmr.msra.gmra.mrb[0].mxu0 %v4107_v55 }
  0xc9   : > { %1721 = vmatmul.mubr.f32.vlgmr.msra.gmra.mrb[0].mxu1 %v4107_v55  ;;  %2969 = vmatpush1.bf16.msra.mxu0 %v5326_v8  ;;  %v5342_v55 = vld [vmem:[#allocation24_spill] sm:$0xff] }
  0xca   : > { %3065 = vmatpush1.bf16.msra.mxu1 %v5327_v12  ;;  %736 = vmatprep.mubr.f32.mxu0 %v5284_v38 }
  0xcb   : > { %1726 = vmatprep.mubr.f32.mxu1 %v5284_v38  ;;  %2971 = vmatprep.subr.bf16.mxu0 %v5328_v14 }
  0xcc   : > { %3067 = vmatprep.subr.bf16.mxu1 %v5329_v15  ;;  %739 = vmatmul.mubr.f32.gmra.mrb[2].mxu0 %v5330_v35 }
  0xcd   : > { %1729 = vmatmul.mubr.f32.gmra.mrb[2].mxu1 %v5330_v35  ;;  %744 = vmatprep.mubr.f32.mxu0 %v5284_v38 }
  0xce   : > { %1734 = vmatprep.mubr.f32.mxu1 %v5284_v38  ;;  %2973 = vmatpush1.bf16.msra.mxu0 %v5331_v36 }
  0xcf   : > { %3069 = vmatpush1.bf16.msra.mxu1 %v5332_v45  ;;  %2975 = vmatprep.subr.bf16.mxu0 %v5333_v50 }
  0xd0   : > { %3071 = vmatprep.subr.bf16.mxu1 %v5334_v54  ;;  %747 = vmatmul.mubr.f32.gmra.mrb[4].mxu0 %v5335_v56 }
  0xd1   : > { %1737 = vmatmul.mubr.f32.gmra.mrb[4].mxu1 %v5335_v56  ;;  %752 = vmatprep.mubr.f32.mxu0 %v5284_v38 }
  0xd2   : > { %1742 = vmatprep.mubr.f32.mxu1 %v5284_v38  ;;  %2977 = vmatpush1.bf16.msra.mxu0 %v5336_v58 }
  0xd3   : > { %3073 = vmatpush1.bf16.msra.mxu1 %v5337_v60  ;;  %2979 = vmatprep.subr.bf16.mxu0 %v5338_v4 }
  0xd4   : > { %3075 = vmatprep.subr.bf16.mxu1 %v5339_v22  ;;  %755 = vmatmul.mubr.f32.gmra.mrb[6].mxu0 %v5340_v11 }
  0xd5   : > { %1745 = vmatmul.mubr.f32.gmra.mrb[6].mxu1 %v5340_v11  ;;  %760 = vmatprep.mubr.f32.mxu0 %v5284_v38 }
  0xd6   : > { %1750 = vmatprep.mubr.f32.mxu1 %v5284_v38  ;;  %2981 = vmatpush1.bf16.msra.mxu0 %v5341_v29 }
  0xd7   : > { %3077 = vmatpush1.bf16.msra.mxu1 %v5342_v55  ;;  %2983 = vmatprep.subr.bf16.mxu0 %v4325_v21  ;;  %v5349_v21 = vld [vmem:[#allocation29_spill] sm:$0xff] }
  0xd8   : > { %3079 = vmatprep.subr.bf16.mxu1 %v4331_v5  ;;  %763 = vmatmul.mubr.f32.gmra.mrb[8].mxu0 %v5343_v46  ;;  %v5350_v5 = vld [vmem:[#allocation32_spill] sm:$0xff] }
  0xd9   : > { %1753 = vmatmul.mubr.f32.gmra.mrb[8].mxu1 %v5343_v46  ;;  %768 = vmatprep.mubr.f32.mxu0 %v5284_v38 }
  0xda   : > { %1758 = vmatprep.mubr.f32.mxu1 %v5284_v38 }
  0xdc   : > { %771 = vmatmul.mubr.f32.gmra.mrb[10].mxu0 %v5344_v32 }
  0xdd   : > { %1761 = vmatmul.mubr.f32.gmra.mrb[10].mxu1 %v5344_v32  ;;  %776 = vmatprep.mubr.f32.mxu0 %v5284_v38 }
  0xde   : > { %1766 = vmatprep.mubr.f32.mxu1 %v5284_v38 }
  0xe0   : > { %779 = vmatmul.mubr.f32.gmra.mrb[12].mxu0 %v4264_v27 }
  0xe1   : > { %1769 = vmatmul.mubr.f32.gmra.mrb[12].mxu1 %v4264_v27  ;;  %784 = vmatprep.mubr.f32.mxu0 %v5284_v38  ;;  %v5346_v27 = vld [vmem:[#allocation28_spill] sm:$0xff] }
  0xe2   : > { %1774 = vmatprep.mubr.f32.mxu1 %v5284_v38 }
  0xe4   : > { %787 = vmatmul.mubr.f32.gmra.mrb[14].mxu0 %v4306_v34 }
  0xe5   : > { %1777 = vmatmul.mubr.f32.gmra.mrb[14].mxu1 %v4306_v34  ;;  %873 = vmatprep.mubr.f32.mxu0 %v5284_v38  ;;  %v5347_v34 = vld [vmem:[#allocation38_spill] sm:$0xff] }
  0xe6   : > { %1863 = vmatprep.mubr.f32.mxu1 %v5284_v38 }
  0xe8   : > { %877 = vmatmul.mubr.f32.vlgmr.msra.gmra.mrb[0].mxu0 %v5345_v0 }
  0xe9   : > { %1867 = vmatmul.mubr.f32.vlgmr.msra.gmra.mrb[0].mxu1 %v5345_v0  ;;  %2985 = vmatpush1.bf16.msra.mxu0 %v4337_v59  ;;  %v5352_v59 = vld [vmem:[#allocation35_spill] sm:$0xff] }
  0xea   : > { %3081 = vmatpush1.bf16.msra.mxu1 %v4343_v48  ;;  %882 = vmatprep.mubr.f32.mxu0 %v5284_v38  ;;  %v5353_v48 = vld [vmem:[#allocation36_spill] sm:$0xff] }
  0xeb   : > { %1872 = vmatprep.mubr.f32.mxu1 %v5284_v38  ;;  %2987 = vmatprep.subr.bf16.mxu0 %v4349_v24 }
  0xec   : > { %3083 = vmatprep.subr.bf16.mxu1 %v4355_v28  ;;  %886 = vmatmul.mubr.f32.gmra.mrb[2].mxu0 %v5346_v27 }
  0xed   : > { %1876 = vmatmul.mubr.f32.gmra.mrb[2].mxu1 %v5346_v27  ;;  %891 = vmatprep.mubr.f32.mxu0 %v5284_v38 }
  0xee   : > { %1881 = vmatprep.mubr.f32.mxu1 %v5284_v38  ;;  %2989 = vmatpush1.bf16.msra.mxu0 %v4361_v61 }
  0xef   : > { %3085 = vmatpush1.bf16.msra.mxu1 %v4367_v1  ;;  %2991 = vmatprep.subr.bf16.mxu0 %v5347_v34 }
  0xf0   : > { %3087 = vmatprep.subr.bf16.mxu1 %v5348_v33  ;;  %895 = vmatmul.mubr.f32.gmra.mrb[4].mxu0 %v5349_v21 }
  0xf1   : > { %1885 = vmatmul.mubr.f32.gmra.mrb[4].mxu1 %v5349_v21  ;;  %900 = vmatprep.mubr.f32.mxu0 %v5284_v38 }
  0xf2   : > { %1890 = vmatprep.mubr.f32.mxu1 %v5284_v38  ;;  %2993 = vmatpush1.bf16.msra.mxu0 %v4385_v25  ;;  %v5351_v25 = vld [vmem:[#allocation33_spill] sm:$0xff] }
  0xf3   : > { %3089 = vmatpush1.bf16.msra.mxu1 %v4391_v17  ;;  %2995 = vmatprep.subr.bf16.mxu0 %v4397_v19 }
  0xf4   : > { %3091 = vmatprep.subr.bf16.mxu1 %v4403_v57  ;;  %904 = vmatmul.mubr.f32.gmra.mrb[6].mxu0 %v5350_v5 }
  0xf5   : > { %1894 = vmatmul.mubr.f32.gmra.mrb[6].mxu1 %v5350_v5  ;;  %909 = vmatprep.mubr.f32.mxu0 %v5284_v38 }
  0xf6   : > { %1899 = vmatprep.mubr.f32.mxu1 %v5284_v38  ;;  %2997 = vmatpush1.bf16.msra.mxu0 %v4411_v7 }
  0xf7   : > { %3093 = vmatpush1.bf16.msra.mxu1 %v4413_v43  ;;  %2999 = vmatprep.subr.bf16.mxu0 %v3956_v16  ;;  %v5354_v16 = vld [vmem:[#allocation37_spill] sm:$0xff] }
  0xf8   : > { %3095 = vmatprep.subr.bf16.mxu1 %v3967_v23  ;;  %913 = vmatmul.mubr.f32.gmra.mrb[8].mxu0 %v5351_v25 }
  0xf9   : > { %1903 = vmatmul.mubr.f32.gmra.mrb[8].mxu1 %v5351_v25  ;;  %918 = vmatprep.mubr.f32.mxu0 %v5284_v38 }
  0xfa   : > { %1908 = vmatprep.mubr.f32.mxu1 %v5284_v38 }
  0xfc   : > { %922 = vmatmul.mubr.f32.gmra.mrb[10].mxu0 %v5352_v59 }
  0xfd   : > { %1912 = vmatmul.mubr.f32.gmra.mrb[10].mxu1 %v5352_v59  ;;  %927 = vmatprep.mubr.f32.mxu0 %v5284_v38 }
  0xfe   : > { %1917 = vmatprep.mubr.f32.mxu1 %v5284_v38 }
 0x100   : > { %931 = vmatmul.mubr.f32.gmra.mrb[12].mxu0 %v5353_v48 }
 0x101   : > { %1921 = vmatmul.mubr.f32.gmra.mrb[12].mxu1 %v5353_v48  ;;  %936 = vmatprep.mubr.f32.mxu0 %v5284_v38 }
 0x102   : > { %1926 = vmatprep.mubr.f32.mxu1 %v5284_v38 }
 0x104   : > { %940 = vmatmul.mubr.f32.gmra.mrb[14].mxu0 %v5354_v16 }
 0x105   : > { %1930 = vmatmul.mubr.f32.gmra.mrb[14].mxu1 %v5354_v16  ;;  %1058 = vmatprep.mubr.f32.mxu0 %v5284_v38 }
 0x106   : > { %2048 = vmatprep.mubr.f32.mxu1 %v5284_v38 }
 0x108   : > { %1060 = vmatmul.mubr.f32.vlgmr.msra.gmra.mrb[0].mxu0 %v4092_v30 }
 0x109   : > { %2050 = vmatmul.mubr.f32.vlgmr.msra.gmra.mrb[0].mxu1 %v4092_v30  ;;  %3001 = vmatpush1.bf16.msra.mxu0 %v5326_v8 }
 0x10a   : > { %3097 = vmatpush1.bf16.msra.mxu1 %v5327_v12  ;;  %1065 = vmatprep.mubr.f32.mxu0 %v5284_v38 }
 0x10b   : > { %2055 = vmatprep.mubr.f32.mxu1 %v5284_v38  ;;  %3003 = vmatprep.subr.bf16.mxu0 %v5328_v14 }
 0x10c   : > { %3099 = vmatprep.subr.bf16.mxu1 %v5329_v15  ;;  %1067 = vmatmul.mubr.f32.gmra.mrb[2].mxu0 %v4135_v13 }
 0x10d   : > { %2057 = vmatmul.mubr.f32.gmra.mrb[2].mxu1 %v4135_v13  ;;  %1072 = vmatprep.mubr.f32.mxu0 %v5284_v38 }
 0x10e   : > { %2062 = vmatprep.mubr.f32.mxu1 %v5284_v38  ;;  %3005 = vmatpush1.bf16.msra.mxu0 %v5331_v36 }
 0x10f   : > { %3101 = vmatpush1.bf16.msra.mxu1 %v5332_v45  ;;  %3007 = vmatprep.subr.bf16.mxu0 %v5333_v50 }
 0x110   : > { %3103 = vmatprep.subr.bf16.mxu1 %v5334_v54  ;;  %1074 = vmatmul.mubr.f32.gmra.mrb[4].mxu0 %v4138_v20 }
 0x111   : > { %2064 = vmatmul.mubr.f32.gmra.mrb[4].mxu1 %v4138_v20  ;;  %1079 = vmatprep.mubr.f32.mxu0 %v5284_v38 }
 0x112   : > { %2069 = vmatprep.mubr.f32.mxu1 %v5284_v38  ;;  %3009 = vmatpush1.bf16.msra.mxu0 %v5336_v58 }
 0x113   : > { %3105 = vmatpush1.bf16.msra.mxu1 %v5337_v60  ;;  %3011 = vmatprep.subr.bf16.mxu0 %v5338_v4 }
 0x114   : > { %3107 = vmatprep.subr.bf16.mxu1 %v5339_v22  ;;  %1081 = vmatmul.mubr.f32.gmra.mrb[6].mxu0 %v4191_v2 }
 0x115   : > { %2071 = vmatmul.mubr.f32.gmra.mrb[6].mxu1 %v4191_v2  ;;  %1086 = vmatprep.mubr.f32.mxu0 %v5284_v38 }
 0x116   : > { %2076 = vmatprep.mubr.f32.mxu1 %v5284_v38  ;;  %3013 = vmatpush1.bf16.msra.mxu0 %v5341_v29 }
 0x117   : > { %3109 = vmatpush1.bf16.msra.mxu1 %v5342_v55 }
 0x118   : > { %1088 = vmatmul.mubr.f32.gmra.mrb[8].mxu0 %v4197_v3 }
 0x119   : > { %2078 = vmatmul.mubr.f32.gmra.mrb[8].mxu1 %v4197_v3  ;;  %1093 = vmatprep.mubr.f32.mxu0 %v5284_v38 }
 0x11a   : > { %2083 = vmatprep.mubr.f32.mxu1 %v5284_v38 }
 0x11c   : > { %1095 = vmatmul.mubr.f32.gmra.mrb[10].mxu0 %v4250_v52 }
 0x11d   : > { %2085 = vmatmul.mubr.f32.gmra.mrb[10].mxu1 %v4250_v52  ;;  %1100 = vmatprep.mubr.f32.mxu0 %v5284_v38 }
 0x11e   : > { %2090 = vmatprep.mubr.f32.mxu1 %v5284_v38 }
 0x120   : > { %1102 = vmatmul.mubr.f32.gmra.mrb[12].mxu0 %v4254_v37 }
 0x121   : > { %2092 = vmatmul.mubr.f32.gmra.mrb[12].mxu1 %v4254_v37  ;;  %1107 = vmatprep.mubr.f32.mxu0 %v5284_v38 }
 0x122   : > { %2097 = vmatprep.mubr.f32.mxu1 %v5284_v38 }
 0x124   : > { %1109 = vmatmul.mubr.f32.gmra.mrb[14].mxu0 %v4301_v39 }
 0x125   : > { %2099 = vmatmul.mubr.f32.gmra.mrb[14].mxu1 %v4301_v39  ;;  %1195 = vmatprep.mubr.f32.mxu0 %v5284_v38 }
 0x126   : > { %2185 = vmatprep.mubr.f32.mxu1 %v5284_v38 }
 0x128   : > { %1197 = vmatmul.mubr.f32.vlgmr.msra.gmra.mrb[0].mxu0 %v4092_v30 }
 0x129   : > { %2187 = vmatmul.mubr.f32.vlgmr.msra.gmra.mrb[0].mxu1 %v4092_v30  ;;  %1202 = vmatprep.mubr.f32.mxu0 %v5284_v38 }
 0x12a   : > { %2192 = vmatprep.mubr.f32.mxu1 %v5284_v38 }
 0x12c   : > { %1204 = vmatmul.mubr.f32.gmra.mrb[2].mxu0 %v4135_v13 }
 0x12d   : > { %2194 = vmatmul.mubr.f32.gmra.mrb[2].mxu1 %v4135_v13  ;;  %1209 = vmatprep.mubr.f32.mxu0 %v5284_v38 }
 0x12e   : > { %2199 = vmatprep.mubr.f32.mxu1 %v5284_v38 }
 0x130   : > { %1211 = vmatmul.mubr.f32.gmra.mrb[4].mxu0 %v4138_v20 }
 0x131   : > { %2201 = vmatmul.mubr.f32.gmra.mrb[4].mxu1 %v4138_v20  ;;  %1216 = vmatprep.mubr.f32.mxu0 %v5284_v38 }
 0x132   : > { %2206 = vmatprep.mubr.f32.mxu1 %v5284_v38 }
 0x134   : > { %1218 = vmatmul.mubr.f32.gmra.mrb[6].mxu0 %v4191_v2 }
 0x135   : > { %2208 = vmatmul.mubr.f32.gmra.mrb[6].mxu1 %v4191_v2  ;;  %1223 = vmatprep.mubr.f32.mxu0 %v5284_v38 }
 0x136   : > { %2213 = vmatprep.mubr.f32.mxu1 %v5284_v38 }
 0x138   : > { %1225 = vmatmul.mubr.f32.gmra.mrb[8].mxu0 %v4197_v3 }
 0x139   : > { %2215 = vmatmul.mubr.f32.gmra.mrb[8].mxu1 %v4197_v3  ;;  %1230 = vmatprep.mubr.f32.mxu0 %v5284_v38 }
 0x13a   : > { %2220 = vmatprep.mubr.f32.mxu1 %v5284_v38 }
 0x13c   : > { %1232 = vmatmul.mubr.f32.gmra.mrb[10].mxu0 %v4250_v52 }
 0x13d   : > { %2222 = vmatmul.mubr.f32.gmra.mrb[10].mxu1 %v4250_v52  ;;  %1237 = vmatprep.mubr.f32.mxu0 %v5284_v38 }
 0x13e   : > { %2227 = vmatprep.mubr.f32.mxu1 %v5284_v38 }
 0x140   : > { %1239 = vmatmul.mubr.f32.gmra.mrb[12].mxu0 %v4254_v37 }
 0x141   : > { %2229 = vmatmul.mubr.f32.gmra.mrb[12].mxu1 %v4254_v37  ;;  %1244 = vmatprep.mubr.f32.mxu0 %v5284_v38 }
 0x142   : > { %2234 = vmatprep.mubr.f32.mxu1 %v5284_v38 }
 0x144   : > { %1246 = vmatmul.mubr.f32.gmra.mrb[14].mxu0 %v4301_v39 }
 0x145   : > { %2236 = vmatmul.mubr.f32.gmra.mrb[14].mxu1 %v4301_v39 }
 0x1fb   : > { %v1198_v23 = vpop.f32.mrb[0].mxu0 }
 0x1fc   : > { %v2188_v13 = vpop.f32.mrb[0].mxu1  ;;  %v3110_v30 = vadd.f32 1e-06, %v1198_v23  ;;  %v1200_v2 = vpop.f32.mrb[1].mxu0 }
 0x1fd   : > { %v3126_v20 = vadd.f32 1e-06, %v2188_v13  ;;  %v2190_v3 = vpop.f32.mrb[1].mxu1  ;;  %v3111_v52 = vadd.f32 1e-06, %v1200_v2 }
 0x1fe   : > { %v3127_v24 = vadd.f32 1e-06, %v2190_v3  ;;  %3382 = vlog2.f32 %v3110_v30 }
 0x1ff   : > { %3384 = vlog2.f32 %v3126_v20  ;;  %v1205_v28 = vpop.f32.mrb[2].mxu0 }
 0x200   : > { %v2195_v37 = vpop.f32.mrb[2].mxu1  ;;  %3386 = vlog2.f32 %v3111_v52  ;;  %v3112_v61 = vadd.f32 1e-06, %v1205_v28  ;;  %v1207_v38 = vpop.f32.mrb[3].mxu0 }
 0x201   : > { %v3128_v1 = vadd.f32 1e-06, %v2195_v37  ;;  %v2197_v17 = vpop.f32.mrb[3].mxu1  ;;  %3388 = vlog2.f32 %v3127_v24  ;;  %v3113_v18 = vadd.f32 1e-06, %v1207_v38 }
 0x202   : > { %v3129_v39 = vadd.f32 1e-06, %v2197_v17  ;;  %3390 = vlog2.f32 %v3112_v61 }
 0x203   : > { %3392 = vlog2.f32 %v3128_v1  ;;  %v1212_v19 = vpop.f32.mrb[4].mxu0 }
 0x204   : > { %v2202_v44 = vpop.f32.mrb[4].mxu1  ;;  %3394 = vlog2.f32 %v3113_v18  ;;  %v3114_v57 = vadd.f32 1e-06, %v1212_v19  ;;  %v1214_v31 = vpop.f32.mrb[5].mxu0 }
 0x205   : > { %v3130_v9 = vadd.f32 1e-06, %v2202_v44  ;;  %v2204_v7 = vpop.f32.mrb[5].mxu1  ;;  %3396 = vlog2.f32 %v3129_v39  ;;  %v3115_v43 = vadd.f32 1e-06, %v1214_v31 }
 0x206   : > { %v3131_v10 = vadd.f32 1e-06, %v2204_v7  ;;  %3398 = vlog2.f32 %v3114_v57 }
 0x207   : > { %3400 = vlog2.f32 %v3130_v9  ;;  %v1219_v26 = vpop.f32.mrb[6].mxu0 }
 0x208   : > { %v2209_v40 = vpop.f32.mrb[6].mxu1  ;;  %v3383_v41 = vpop.eup %3382  ;;  %3402 = vlog2.f32 %v3115_v43  ;;  %v3116_v42 = vadd.f32 1e-06, %v1219_v26 }
 0x209   : > { %v3132_v47 = vadd.f32 1e-06, %v2209_v40  ;;  %v1221_v49 = vpop.f32.mrb[7].mxu0  ;;  %v2211_v51 = vpop.f32.mrb[7].mxu1  ;;  %v2243_v62 = vmul.f32 0.6931472, %v3383_v41  ;;  %3404 = vlog2.f32 %v3131_v10 }
 0x20a   : > { %v3385_v53 = vpop.eup %3384  ;;  %v3117_v63 = vadd.f32 1e-06, %v1221_v49  ;;  %v3133_v6 = vadd.f32 1e-06, %v2211_v51  ;;  %3406 = vlog2.f32 %v3116_v42 }
 0x20b   : > { %v3387_v8 = vpop.eup %3386  ;;  %v2247_v12 = vmul.f32 0.6931472, %v3385_v53  ;;  %v2306_v15 = vmul.f32 -0.98, %v2243_v62  ;;  %3408 = vlog2.f32 %v3132_v47  ;;  %v1226_v36 = vpop.f32.mrb[8].mxu0 }
 0x20c   : > { %v3389_v14 = vpop.eup %3388  ;;  %v2245_v35 = vmul.f32 0.6931472, %v3387_v8  ;;  %v4645_v45 = vpop.f32.mrb[8].mxu1  ;;  %3410 = vlog2.f32 %v3117_v63  ;;  %v3118_v58 = vadd.f32 1e-06, %v1226_v36 }
 0x20d   : > { %v3391_v50 = vpop.eup %3390  ;;  %v2308_v54 = vmul.f32 -0.98, %v2247_v12  ;;  %v2249_v56 = vmul.f32 0.6931472, %v3389_v14  ;;  %v2338_v4 = vmul.f32 1.442695, %v2306_v15  ;;  %3412 = vlog2.f32 %v3133_v6 }
 0x20e   : > { %v3393_v60 = vpop.eup %3392  ;;  %v2307_v22 = vmul.f32 -0.98, %v2245_v35  ;;  %v2251_v11 = vmul.f32 0.6931472, %v3391_v50  ;;  %3414 = vlog2.f32 %v3118_v58  ;;  %v3574_v6 = vld [vmem:[%s3935_s24] sm:$0xff]  ;;  %v4648_v15 = vpop.f32.mrb[9].mxu0 }
 0x20f   : > { %v3395_v29 = vpop.eup %3394  ;;  %v2342_v55 = vmul.f32 1.442695, %v2308_v54  ;;  %v2309_v46 = vmul.f32 -0.98, %v2249_v56  ;;  %v2255_v32 = vmul.f32 0.6931472, %v3393_v60  ;;  %3416 = vpow2.f32 %v2338_v4 }
 0x210   : > { %v3397_v0 = vpop.eup %3396  ;;  %v2340_v27 = vmul.f32 1.442695, %v2307_v22  ;;  %v2310_v34 = vmul.f32 -0.98, %v2251_v11  ;;  %v2253_v33 = vmul.f32 0.6931472, %v3395_v29 }
 0x211   : > { %v3399_v21 = vpop.eup %3398  ;;  %3418 = vpow2.f32 %v2342_v55  ;;  %v2344_v5 = vmul.f32 1.442695, %v2309_v46  ;;  %v2312_v25 = vmul.f32 -0.98, %v2255_v32  ;;  %v2257_v59 = vmul.f32 0.6931472, %v3397_v0 }
 0x212   : > { %v3401_v48 = vpop.eup %3400  ;;  %3420 = vpow2.f32 %v2340_v27  ;;  %v2346_v16 = vmul.f32 1.442695, %v2310_v34  ;;  %v2311_v23 = vmul.f32 -0.98, %v2253_v33  ;;  %v2259_v13 = vmul.f32 0.6931472, %v3399_v21 }
 0x213   : > { %v3403_v30 = vpop.eup %3402  ;;  %3422 = vpow2.f32 %v2344_v5  ;;  %v2350_v20 = vmul.f32 1.442695, %v2312_v25  ;;  %v2313_v2 = vmul.f32 -0.98, %v2257_v59  ;;  %v2263_v3 = vmul.f32 0.6931472, %v3401_v48 }
 0x214   : > { %v3405_v52 = vpop.eup %3404  ;;  %3424 = vpow2.f32 %v2346_v16  ;;  %v2348_v24 = vmul.f32 1.442695, %v2311_v23  ;;  %v2314_v28 = vmul.f32 -0.98, %v2259_v13  ;;  %v2261_v37 = vmul.f32 0.6931472, %v3403_v30 }
 0x215   : > { %v3407_v61 = vpop.eup %3406  ;;  %3426 = vpow2.f32 %v2350_v20  ;;  %v2352_v1 = vmul.f32 1.442695, %v2313_v2  ;;  %v2316_v38 = vmul.f32 -0.98, %v2263_v3  ;;  %v2265_v17 = vmul.f32 0.6931472, %v3405_v52 }
 0x216   : > { %v3409_v18 = vpop.eup %3408  ;;  %3428 = vpow2.f32 %v2348_v24  ;;  %v2354_v39 = vmul.f32 1.442695, %v2314_v28  ;;  %v2315_v19 = vmul.f32 -0.98, %v2261_v37  ;;  %v2267_v44 = vmul.f32 0.6931472, %v3407_v61 }
 0x217   : > { %v3411_v57 = vpop.eup %3410  ;;  %3430 = vpow2.f32 %v2352_v1  ;;  %v2358_v9 = vmul.f32 1.442695, %v2316_v38  ;;  %v2317_v31 = vmul.f32 -0.98, %v2265_v17  ;;  %v2271_v7 = vmul.f32 0.6931472, %v3409_v18 }
 0x218   : > { %v3413_v43 = vpop.eup %3412  ;;  %v2356_v10 = vmul.f32 1.442695, %v2315_v19  ;;  %v2318_v26 = vmul.f32 -0.98, %v2267_v44  ;;  %v2269_v40 = vmul.f32 0.6931472, %v3411_v57  ;;  %3432 = vpow2.f32 %v2354_v39 }
 0x219   : > { %v3415_v41 = vpop.eup %3414  ;;  %v2360_v42 = vmul.f32 1.442695, %v2317_v31  ;;  %v2320_v47 = vmul.f32 -0.98, %v2271_v7  ;;  %v2273_v49 = vmul.f32 0.6931472, %v3413_v43  ;;  %3434 = vpow2.f32 %v2358_v9 }
 0x21a   : > { %v3417_v51 = vpop.eup %3416  ;;  %v2362_v53 = vmul.f32 1.442695, %v2318_v26  ;;  %v2319_v62 = vmul.f32 -0.98, %v2269_v40  ;;  %3436 = vpow2.f32 %v2356_v10  ;;  %v2275_v14 = vmul.f32 0.6931472, %v3415_v41 }
 0x21b   : > { %v3419_v63 = vpop.eup %3418  ;;  %v2402_v8 = vmul.f32 %v3574_v6, %v3417_v51  ;;  %v2366_v12 = vmul.f32 1.442695, %v2320_v47  ;;  %v4650_v35 = vpop.f32.mrb[9].mxu1  ;;  %v3575_v50 = vld [vmem:[%s3935_s24 + $0x10] sm:$0xff]  ;;  %3438 = vpow2.f32 %v2360_v42  ;;  %v3576_v22 = vld [vmem:[%s3935_s24 + $0x8] sm:$0xff]  ;;  %v3577_v27 = vld [vmem:[%s3935_s24 + $0x18] sm:$0xff] }
 0x21c   : > { %v3421_v36 = vpop.eup %3420  ;;  %v2404_v54 = vmul.f32 %v3575_v50, %v3419_v63  ;;  %v4653_v56 = vpop.f32.mrb[10].mxu0  ;;  %3440 = vpow2.f32 %v2362_v53  ;;  %v2321_v29 = vmul.f32 -0.98, %v2273_v49  ;;  %v2364_v33 = vmul.f32 1.442695, %v2319_v62  ;;  %v3578_v52 = vld [vmem:[%s3935_s24 + $0x20] sm:$0xff] }
 0x21d   : > { %v4655_v58 = vpop.f32.mrb[10].mxu1  ;;  %v3423_v60 = vpop.eup %3422  ;;  %v4657_v4 = vadd.f32 2.0, %v2402_v8  ;;  %v2403_v11 = vmul.f32 %v3576_v22, %v3421_v36  ;;  %3442 = vpow2.f32 %v2366_v12  ;;  %v2322_v59 = vmul.f32 -0.98, %v2275_v14  ;;  %v3579_v28 = vld [vmem:[%s3935_s24 + $0x30] sm:$0xff]  ;;  %v3580_v38 = vld [vmem:[%s3935_s24 + $0x28] sm:$0xff] }
 0x21e   : > { %v4660_v55 = vpop.f32.mrb[11].mxu0  ;;  %v4662_v46 = vpop.f32.mrb[11].mxu1  ;;  %v4664_v0 = vadd.f32 2.0, %v2404_v54  ;;  %v2405_v34 = vmul.f32 %v3577_v27, %v3423_v60  ;;  %v3581_v18 = vld [vmem:[%s3935_s24 + $0x38] sm:$0xff]  ;;  %v2368_v19 = vmul.f32 1.442695, %v2321_v29 }
 0x21f   : > { %v3425_v32 = vpop.eup %3424  ;;  %v4667_v21 = vpop.f32.mrb[12].mxu0  ;;  %3444 = vrsqrt.f32 %v4657_v4  ;;  %v4681_v2 = vadd.f32 2.0, %v2403_v11  ;;  %v4694_v57 = vmul.f32 1.442695, %v2322_v59  ;;  %vm2468_vm1 = vcmp.eq.f32.partialorder %v4657_v4, inf  ;;  %v3582_v49 = vld [vmem:[%s3935_s24 + $0x40] sm:$0xff] }
 0x220   : > { %v4669_v5 = vpop.f32.mrb[12].mxu1  ;;  %v3427_v25 = vpop.eup %3426  ;;  %3446 = vrsqrt.f32 %v4664_v0  ;;  %v4683_v3 = vadd.f32 2.0, %v2405_v34  ;;  %v2406_v24 = vmul.f32 %v3578_v52, %v3425_v32  ;;  %vm2470_vm2 = vcmp.eq.f32.partialorder %v4657_v4, 0.0  ;;  %v3583_v53 = vld [vmem:[%s3935_s24 + $0x50] sm:$0xff]  ;;  %v3585_v60 = vld [vmem:[%s3935_s24 + $0x58] sm:$0xff] }
 0x221   : > { %v4672_v48 = vpop.f32.mrb[13].mxu0  ;;  %v4674_v16 = vpop.f32.mrb[13].mxu1  ;;  %v2408_v37 = vmul.f32 %v3579_v28, %v3427_v25  ;;  %3448 = vpow2.f32 %v2364_v33  ;;  %v2471_v31 = vand.u32 2147483648, %v4657_v4  ;;  %vm2482_vm3 = vcmp.eq.f32.partialorder %v4664_v0, inf }
 0x222   : > { %v3429_v23 = vpop.eup %3428  ;;  %v4677_v13 = vpop.f32.mrb[14].mxu0  ;;  %3450 = vrsqrt.f32 %v4681_v2  ;;  %v4701_v43 = vadd.f32 2.0, %v2406_v24  ;;  %vm2484_vm4 = vcmp.eq.f32.partialorder %v4664_v0, 0.0  ;;  %v2485_v41 = vand.u32 2147483648, %v4664_v0 }
 0x223   : > { %v4679_v30 = vpop.f32.mrb[14].mxu1  ;;  %v3431_v20 = vpop.eup %3430  ;;  %v2407_v17 = vmul.f32 %v3580_v38, %v3429_v23  ;;  %3452 = vrsqrt.f32 %v4683_v3  ;;  %v4703_v10 = vadd.f32 2.0, %v2408_v37  ;;  %v4717_v63 = vadd.f32 1e-06, %v4645_v45  ;;  %v3584_v45 = vld [vmem:[%s3935_s24 + $0x48] sm:$0xff] }
 0x224   : > { %v4687_v61 = vpop.f32.mrb[15].mxu0  ;;  %v4689_v1 = vpop.f32.mrb[15].mxu1  ;;  %v2409_v39 = vmul.f32 %v3581_v18, %v3431_v20  ;;  %3454 = vpow2.f32 %v2368_v19  ;;  %vm2475_vm5 = vcmp.eq.f32.partialorder %v4681_v2, inf  ;;  %vm2477_vm6 = vcmp.eq.f32.partialorder %v4681_v2, 0.0 }
 0x225   : > { %v3433_v44 = vpop.eup %3432  ;;  %v4705_v26 = vadd.f32 2.0, %v2407_v17  ;;  %3456 = vrsqrt.f32 %v4701_v43  ;;  %v2478_v8 = vand.u32 2147483648, %v4681_v2  ;;  %vm2489_vm7 = vcmp.eq.f32.partialorder %v4683_v3, inf }
 0x226   : > { %v3435_v9 = vpop.eup %3434  ;;  %v4709_v42 = vadd.f32 2.0, %v2409_v39  ;;  %v2410_v51 = vmul.f32 %v3582_v49, %v3433_v44  ;;  %3458 = vrsqrt.f32 %v4703_v10  ;;  %vm2491_vm8 = vcmp.eq.f32.partialorder %v4683_v3, 0.0 }
 0x227   : > { %v3437_v7 = vpop.eup %3436  ;;  %v2412_v62 = vmul.f32 %v3583_v53, %v3435_v9  ;;  %3460 = vrsqrt.f32 %v4705_v26  ;;  %v2492_v54 = vand.u32 2147483648, %v4683_v3  ;;  %vm2496_vm9 = vcmp.eq.f32.partialorder %v4701_v43, inf }
 0x228   : > { %v3439_v40 = vpop.eup %3438  ;;  %v2411_v14 = vmul.f32 %v3584_v45, %v3437_v7  ;;  %3462 = vrsqrt.f32 %v4709_v42  ;;  %v4735_v29 = vadd.f32 2.0, %v2410_v51  ;;  %vm2498_vm10 = vcmp.eq.f32.partialorder %v4701_v43, 0.0 }
 0x229   : > { %v4711_v47 = vpop.eup %3440  ;;  %v2413_v22 = vmul.f32 %v3585_v60, %v3439_v40  ;;  %v4737_v32 = vadd.f32 2.0, %v2412_v62  ;;  %v2499_v33 = vand.u32 2147483648, %v4701_v43  ;;  %vm2510_vm11 = vcmp.eq.f32.partialorder %v4703_v10, inf  ;;  %v3586_v40 = vld [vmem:[%s3935_s24 + $0x60] sm:$0xff] }
 0x22a   : > { %v4719_v6 = vpop.eup %3442  ;;  %v2513_v25 = vand.u32 2147483648, %v4703_v10  ;;  %vm2512_vm12 = vcmp.eq.f32.partialorder %v4703_v10, 0.0  ;;  %vm2503_vm13 = vcmp.eq.f32.partialorder %v4705_v26, inf  ;;  %3464 = vrsqrt.f32 %v4735_v29 }
 0x22b   : > { %v3445_v12 = vpop.eup %3444  ;;  %v4756_v52 = vadd.f32 2.0, %v2411_v14  ;;  %vm2505_vm14 = vcmp.eq.f32.partialorder %v4705_v26, 0.0  ;;  %v2506_v38 = vand.u32 2147483648, %v4705_v26  ;;  %3466 = vrsqrt.f32 %v4737_v32 }
 0x22c   : > { %v3447_v36 = vpop.eup %3446  ;;  %v2467_v50 = vmul.f32 %v3445_v12, %v4657_v4  ;;  %v4765_v39 = vadd.f32 2.0, %v2413_v22  ;;  %vm2517_vm15 = vcmp.eq.f32.partialorder %v4709_v42, inf  ;;  %vm2519_vm0 = vcmp.eq.f32.partialorder %v4709_v42, 0.0 }
 0x22d   : > { %v2481_v11 = vmul.f32 %v3447_v36, %v4664_v0  ;;  %v4739_v27 = vpop.eup %3448  ;;  %v2520_v44 = vand.u32 2147483648, %v4709_v42  ;;  %3468 = vrsqrt.f32 %v4756_v52  ;;  %v2527_v14 = vand.u32 2147483648, %v4735_v29 }
 0x22e   : > { %v2469_v34 = vsel %vm2468_vm1, %v4657_v4, %v2467_v50  ;;  %v3451_v59 = vpop.eup %3450  ;;  %vm2524_vm1 = vcmp.eq.f32.partialorder %v4735_v29, inf  ;;  %3470 = vrsqrt.f32 %v4765_v39 }
 0x22f   : > { %v2472_v23 = vsel %vm2470_vm2, %v2471_v31, %v2469_v34  ;;  %v2483_v20 = vsel %vm2482_vm3, %v4664_v0, %v2481_v11  ;;  %v3453_v24 = vpop.eup %3452  ;;  %v2474_v4 = vmul.f32 %v3451_v59, %v4681_v2  ;;  %vm2526_vm2 = vcmp.eq.f32.partialorder %v4735_v29, 0.0 }
 0x230   : > { %v2879_v28 = vadd.f32 -1.4142135, %v2472_v23  ;;  %v2486_v37 = vsel %vm2484_vm4, %v2485_v41, %v2483_v20  ;;  %v2488_v18 = vmul.f32 %v3453_v24, %v4683_v3  ;;  %v4767_v19 = vpop.eup %3454  ;;  %v2414_v41 = vmul.f32 %v3586_v40, %v4711_v47  ;;  %v3587_v20 = vld [vmem:[%s3935_s24 + $0x70] sm:$0xff] }
 0x231   : > { %v2881_v17 = vadd.f32 -1.4142135, %v2486_v37  ;;  %v2476_v0 = vsel %vm2475_vm5, %v4681_v2, %v2474_v4  ;;  %v3457_v9 = vpop.eup %3456  ;;  %vm2538_vm3 = vcmp.eq.f32.partialorder %v4737_v32, inf  ;;  %vm2540_vm4 = vcmp.eq.f32.partialorder %v4737_v32, 0.0 }
 0x232   : > { %2722 = vst [vmem:[%s4771_s17] sm:$0xff] %v2879_v28  ;;  %v2479_v31 = vsel %vm2477_vm6, %v2478_v8, %v2476_v0  ;;  %v2490_v7 = vsel %vm2489_vm7, %v4683_v3, %v2488_v18  ;;  %v3459_v49 = vpop.eup %3458  ;;  %v2495_v62 = vmul.f32 %v3457_v9, %v4701_v43  ;;  %v4816_v34 = vadd.f32 2.0, %v2414_v41 }
 0x233   : > { %2724 = vst [vmem:[%s4771_s17 + $0x10] sm:$0xff] %v2881_v17  ;;  %v2880_v51 = vadd.f32 -1.4142135, %v2479_v31  ;;  %v2493_v53 = vsel %vm2491_vm8, %v2492_v54, %v2490_v7  ;;  %v3461_v2 = vpop.eup %3460  ;;  %v2509_v12 = vmul.f32 %v3459_v49, %v4703_v10  ;;  %v2541_v4 = vand.u32 2147483648, %v4737_v32  ;;  %v3588_v17 = vld [vmem:[%s3935_s24 + $0x68] sm:$0xff]  ;;  %v3589_v31 = vld [vmem:[%s3935_s24 + $0x78] sm:$0xff] }
 0x234   : > { %v2882_v8 = vadd.f32 -1.4142135, %v2493_v53  ;;  %v3463_v45 = vpop.eup %3462  ;;  %v2497_v47 = vsel %vm2496_vm9, %v4701_v43, %v2495_v62  ;;  %v2502_v3 = vmul.f32 %v3461_v2, %v4705_v26  ;;  %3472 = vrsqrt.f32 %v4816_v34 }
 0x235   : > { %2723 = vst [vmem:[%s4771_s17 + $0x8] sm:$0xff] %v2880_v51  ;;  %v2500_v36 = vsel %vm2498_vm10, %v2499_v33, %v2497_v47  ;;  %v2511_v50 = vsel %vm2510_vm11, %v4703_v10, %v2509_v12  ;;  %v2516_v54 = vmul.f32 %v3463_v45, %v4709_v42  ;;  %v3465_v43 = vpop.eup %3464  ;;  %v2416_v10 = vmul.f32 %v3587_v20, %v4719_v6 }
 0x236   : > { %2725 = vst [vmem:[%s4771_s17 + $0x18] sm:$0xff] %v2882_v8  ;;  %v2883_v60 = vadd.f32 -1.4142135, %v2500_v36  ;;  %v2514_v22 = vsel %vm2512_vm12, %v2513_v25, %v2511_v50  ;;  %v2504_v11 = vsel %vm2503_vm13, %v4705_v26, %v2502_v3  ;;  %v2523_v28 = vmul.f32 %v3465_v43, %v4735_v29  ;;  %v3467_v26 = vpop.eup %3466 }
 0x237   : > { %v2885_v33 = vadd.f32 -1.4142135, %v2514_v22  ;;  %v2507_v59 = vsel %vm2505_vm14, %v2506_v38, %v2504_v11  ;;  %v2518_v23 = vsel %vm2517_vm15, %v4709_v42, %v2516_v54  ;;  %vm2531_vm5 = vcmp.eq.f32.partialorder %v4756_v52, inf  ;;  %v3469_v0 = vpop.eup %3468 }
 0x238   : > { %2726 = vst [vmem:[%s4771_s17 + $0x20] sm:$0xff] %v2883_v60  ;;  %v2884_v25 = vadd.f32 -1.4142135, %v2507_v59  ;;  %v2521_v24 = vsel %vm2519_vm0, %v2520_v44, %v2518_v23  ;;  %vm2533_vm6 = vcmp.eq.f32.partialorder %v4756_v52, 0.0  ;;  %v2525_v42 = vsel %vm2524_vm1, %v4735_v29, %v2523_v28  ;;  %v3471_v49 = vpop.eup %3470 }
 0x239   : > { %2728 = vst [vmem:[%s4771_s17 + $0x30] sm:$0xff] %v2885_v33  ;;  %v2886_v37 = vadd.f32 -1.4142135, %v2521_v24  ;;  %v2537_v6 = vmul.f32 %v3467_v26, %v4737_v32  ;;  %v4839_v38 = vadd.f32 2.0, %v2416_v10  ;;  %v2415_v18 = vmul.f32 %v3588_v17, %v4739_v27 }
 0x23a   : > { %2727 = vst [vmem:[%s4771_s17 + $0x28] sm:$0xff] %v2884_v25  ;;  %v2528_v44 = vsel %vm2526_vm2, %v2527_v14, %v2525_v42  ;;  %v2534_v9 = vand.u32 2147483648, %v4756_v52  ;;  %v2417_v7 = vmul.f32 %v3589_v31, %v4767_v19  ;;  %3474 = vpow2.f32 %v4694_v57 }
 0x23b   : > { %2729 = vst [vmem:[%s4771_s17 + $0x38] sm:$0xff] %v2886_v37  ;;  %v2887_v40 = vadd.f32 -1.4142135, %v2528_v44  ;;  %v2539_v41 = vsel %vm2538_vm3, %v4737_v32, %v2537_v6  ;;  %v2530_v27 = vmul.f32 %v3469_v0, %v4756_v52  ;;  %3476 = vrsqrt.f32 %v4839_v38 }
 0x23c   : > { %v2542_v29 = vsel %vm2540_vm4, %v2541_v4, %v2539_v41  ;;  %vm2545_vm7 = vcmp.eq.f32.partialorder %v4765_v39, inf  ;;  %vm2547_vm8 = vcmp.eq.f32.partialorder %v4765_v39, 0.0  ;;  %v2548_v57 = vand.u32 2147483648, %v4765_v39 }
 0x23d   : > { %2730 = vst [vmem:[%s4771_s17 + $0x40] sm:$0xff] %v2887_v40  ;;  %v2889_v19 = vadd.f32 -1.4142135, %v2542_v29  ;;  %v2532_v51 = vsel %vm2531_vm5, %v4756_v52, %v2530_v27  ;;  %v2544_v53 = vmul.f32 %v3471_v49, %v4765_v39  ;;  %v4865_v62 = vadd.f32 2.0, %v2415_v18 }
 0x23e   : > { %v2535_v32 = vsel %vm2533_vm6, %v2534_v9, %v2532_v51  ;;  %v4869_v2 = vadd.f32 2.0, %v2417_v7  ;;  %3478 = vlog2.f32 %v4717_v63  ;;  %v3119_v8 = vadd.f32 1e-06, %v4648_v15  ;;  %v3473_v52 = vpop.eup %3472 }
 0x23f   : > { %2732 = vst [vmem:[%s4771_s17 + $0x50] sm:$0xff] %v2889_v19  ;;  %v2888_v12 = vadd.f32 -1.4142135, %v2535_v32  ;;  %v2546_v45 = vsel %vm2545_vm7, %v4765_v39, %v2544_v53  ;;  %3480 = vrsqrt.f32 %v4865_v62  ;;  %v3135_v47 = vadd.f32 1e-06, %v4650_v35 }
 0x240   : > { %v2549_v3 = vsel %vm2547_vm8, %v2548_v57, %v2546_v45  ;;  %vm2552_vm9 = vcmp.eq.f32.partialorder %v4816_v34, inf  ;;  %3482 = vrsqrt.f32 %v4869_v2  ;;  %vm2554_vm10 = vcmp.eq.f32.partialorder %v4816_v34, 0.0 }
 0x241   : > { %2731 = vst [vmem:[%s4771_s17 + $0x48] sm:$0xff] %v2888_v12  ;;  %v2890_v63 = vadd.f32 -1.4142135, %v2549_v3  ;;  %v2555_v15 = vand.u32 2147483648, %v4816_v34  ;;  %vm2566_vm11 = vcmp.eq.f32.partialorder %v4839_v38, inf  ;;  %v2551_v14 = vmul.f32 %v3473_v52, %v4816_v34 }
 0x242   : > { %3484 = vlog2.f32 %v3119_v8  ;;  %v3120_v35 = vadd.f32 1e-06, %v4653_v56  ;;  %v3136_v39 = vadd.f32 1e-06, %v4655_v58  ;;  %vm2568_vm12 = vcmp.eq.f32.partialorder %v4839_v38, 0.0 }
 0x243   : > { %2733 = vst [vmem:[%s4771_s17 + $0x58] sm:$0xff] %v2890_v63  ;;  %3486 = vlog2.f32 %v3135_v47  ;;  %v3121_v36 = vadd.f32 1e-06, %v4660_v55  ;;  %v3137_v50 = vadd.f32 1e-06, %v4662_v46  ;;  %v2553_v60 = vsel %vm2552_vm9, %v4816_v34, %v2551_v14  ;;  %v3590_v55 = vld [vmem:[%s3935_s24 + $0x80] sm:$0xff] }
 0x244   : > { %v3475_v54 = vpop.eup %3474  ;;  %v2569_v22 = vand.u32 2147483648, %v4839_v38  ;;  %3488 = vlog2.f32 %v3120_v35  ;;  %v3122_v56 = vadd.f32 1e-06, %v4667_v21  ;;  %v2556_v11 = vsel %vm2554_vm10, %v2555_v15, %v2553_v60 }
 0x245   : > { %v3477_v58 = vpop.eup %3476  ;;  %vm2559_vm13 = vcmp.eq.f32.partialorder %v4865_v62, inf  ;;  %v2418_v43 = vmul.f32 %v3590_v55, %v3475_v54  ;;  %3490 = vlog2.f32 %v3136_v39  ;;  %v2891_v46 = vadd.f32 -1.4142135, %v2556_v11 }
 0x246   : > { %v2565_v33 = vmul.f32 %v3477_v58, %v4839_v38  ;;  %vm2561_vm14 = vcmp.eq.f32.partialorder %v4865_v62, 0.0  ;;  %3492 = vlog2.f32 %v3121_v36  ;;  %v2562_v59 = vand.u32 2147483648, %v4865_v62 }
 0x247   : > { %v4904_v23 = vadd.f32 2.0, %v2418_v43  ;;  %3494 = vlog2.f32 %v3137_v50  ;;  %v3138_v21 = vadd.f32 1e-06, %v4669_v5  ;;  %2734 = vst [vmem:[%s4771_s17 + $0x60] sm:$0xff] %v2891_v46  ;;  %vm2573_vm15 = vcmp.eq.f32.partialorder %v4869_v2, inf }
 0x248   : > { %v3479_v34 = vpop.eup %3478  ;;  %v2567_v20 = vsel %vm2566_vm11, %v4839_v38, %v2565_v33  ;;  %3496 = vlog2.f32 %v3122_v56  ;;  %v3123_v10 = vadd.f32 1e-06, %v4672_v48  ;;  %vm2575_vm0 = vcmp.eq.f32.partialorder %v4869_v2, 0.0 }
 0x249   : > { %v3481_v25 = vpop.eup %3480  ;;  %v2570_v24 = vsel %vm2568_vm12, %v2569_v22, %v2567_v20  ;;  %3498 = vrsqrt.f32 %v4904_v23  ;;  %v3139_v5 = vadd.f32 1e-06, %v4674_v16  ;;  %v2576_v4 = vand.u32 2147483648, %v4869_v2 }
 0x24a   : > { %v3483_v28 = vpop.eup %3482  ;;  %v2893_v26 = vadd.f32 -1.4142135, %v2570_v24  ;;  %v2558_v37 = vmul.f32 %v3481_v25, %v4865_v62  ;;  %v2279_v42 = vmul.f32 0.6931472, %v3479_v34  ;;  %3500 = vlog2.f32 %v3138_v21 }
 0x24b   : > { %v2572_v48 = vmul.f32 %v3483_v28, %v4869_v2  ;;  %v3124_v6 = vadd.f32 1e-06, %v4677_v13  ;;  %v3140_v38 = vadd.f32 1e-06, %v4679_v30  ;;  %3502 = vlog2.f32 %v3123_v10 }
 0x24c   : > { %v3485_v17 = vpop.eup %3484  ;;  %2736 = vst [vmem:[%s4771_s17 + $0x70] sm:$0xff] %v2893_v26  ;;  %v2560_v16 = vsel %vm2559_vm13, %v4865_v62, %v2558_v37  ;;  %v2324_v18 = vmul.f32 -0.98, %v2279_v42  ;;  %v3125_v0 = vadd.f32 1e-06, %v4687_v61  ;;  %vm2580_vm1 = vcmp.eq.f32.partialorder %v4904_v23, inf }
 0x24d   : > { %v3487_v44 = vpop.eup %3486  ;;  %v2563_v9 = vsel %vm2561_vm14, %v2562_v59, %v2560_v16  ;;  %v2574_v13 = vsel %vm2573_vm15, %v4869_v2, %v2572_v48  ;;  %v2277_v30 = vmul.f32 0.6931472, %v3485_v17  ;;  %3504 = vlog2.f32 %v3139_v5 }
 0x24e   : > { %v3489_v31 = vpop.eup %3488  ;;  %v2892_v7 = vadd.f32 -1.4142135, %v2563_v9  ;;  %v2577_v40 = vsel %vm2575_vm0, %v2576_v4, %v2574_v13  ;;  %v2374_v61 = vmul.f32 1.442695, %v2324_v18  ;;  %v2281_v41 = vmul.f32 0.6931472, %v3487_v44 }
 0x24f   : > { %v3491_v27 = vpop.eup %3490  ;;  %v2894_v49 = vadd.f32 -1.4142135, %v2577_v40  ;;  %v2323_v29 = vmul.f32 -0.98, %v2277_v30  ;;  %v2283_v57 = vmul.f32 0.6931472, %v3489_v31  ;;  %3506 = vlog2.f32 %v3124_v6 }
 0x250   : > { %v3493_v19 = vpop.eup %3492  ;;  %2735 = vst [vmem:[%s4771_s17 + $0x68] sm:$0xff] %v2892_v7  ;;  %vm2582_vm2 = vcmp.eq.f32.partialorder %v4904_v23, 0.0  ;;  %3508 = vpow2.f32 %v2374_v61  ;;  %v2325_v51 = vmul.f32 -0.98, %v2281_v41  ;;  %v2287_v53 = vmul.f32 0.6931472, %v3491_v27 }
 0x251   : > { %v3495_v62 = vpop.eup %3494  ;;  %2737 = vst [vmem:[%s4771_s17 + $0x78] sm:$0xff] %v2894_v49  ;;  %v2372_v32 = vmul.f32 1.442695, %v2323_v29  ;;  %v2326_v2 = vmul.f32 -0.98, %v2283_v57  ;;  %3510 = vlog2.f32 %v3140_v38  ;;  %v2583_v54 = vand.u32 2147483648, %v4904_v23 }
 0x252   : > { %v2285_v8 = vmul.f32 0.6931472, %v3493_v19  ;;  %v3497_v12 = vpop.eup %3496  ;;  %v2376_v45 = vmul.f32 1.442695, %v2325_v51  ;;  %v2328_v47 = vmul.f32 -0.98, %v2287_v53  ;;  %3512 = vlog2.f32 %v3125_v0 }
 0x253   : > { %v2289_v3 = vmul.f32 0.6931472, %v3495_v62  ;;  %v3499_v52 = vpop.eup %3498  ;;  %3514 = vpow2.f32 %v2372_v32  ;;  %v2378_v63 = vmul.f32 1.442695, %v2326_v2  ;;  %v2291_v14 = vmul.f32 0.6931472, %v3497_v12 }
 0x254   : > { %v2327_v15 = vmul.f32 -0.98, %v2285_v8  ;;  %v2579_v35 = vmul.f32 %v3499_v52, %v4904_v23  ;;  %3516 = vpow2.f32 %v2376_v45  ;;  %v2382_v39 = vmul.f32 1.442695, %v2328_v47  ;;  %v3501_v50 = vpop.eup %3500  ;;  %v3592_v13 = vld [vmem:[%s3935_s24 + $0x88] sm:$0xff]  ;;  %v3593_v41 = vld [vmem:[%s3935_s24 + $0x98] sm:$0xff] }
 0x255   : > { %v2329_v36 = vmul.f32 -0.98, %v2289_v3  ;;  %3518 = vpow2.f32 %v2378_v63  ;;  %v2330_v22 = vmul.f32 -0.98, %v2291_v14  ;;  %v3503_v56 = vpop.eup %3502  ;;  %v2295_v55 = vmul.f32 0.6931472, %v3501_v50 }
 0x256   : > { %v2380_v60 = vmul.f32 1.442695, %v2327_v15  ;;  %v2581_v58 = vsel %vm2580_vm1, %v4904_v23, %v2579_v35  ;;  %3520 = vpow2.f32 %v2382_v39  ;;  %v2293_v59 = vmul.f32 0.6931472, %v3503_v56  ;;  %v3591_v23 = vld [vmem:[%s3935_s24 + $0x90] sm:$0xff]  ;;  %v3594_v49 = vld [vmem:[%s3935_s24 + $0xa0] sm:$0xff] }
 0x257   : > { %v2384_v11 = vmul.f32 1.442695, %v2329_v36  ;;  %v3505_v43 = vpop.eup %3504  ;;  %v2584_v46 = vsel %vm2582_vm2, %v2583_v54, %v2581_v58  ;;  %v2386_v33 = vmul.f32 1.442695, %v2330_v22  ;;  %v2332_v34 = vmul.f32 -0.98, %v2295_v55 }
 0x258   : > { %3522 = vpow2.f32 %v2380_v60  ;;  %v2895_v21 = vadd.f32 -1.4142135, %v2584_v46  ;;  %v2297_v20 = vmul.f32 0.6931472, %v3505_v43  ;;  %v2331_v25 = vmul.f32 -0.98, %v2293_v59 }
 0x259   : > { %3524 = vpow2.f32 %v2384_v11  ;;  %v3507_v10 = vpop.eup %3506  ;;  %v2390_v5 = vmul.f32 1.442695, %v2332_v34  ;;  %v3141_v48 = vadd.f32 1e-06, %v4689_v1  ;;  %v3595_v19 = vld [vmem:[%s3935_s24 + $0xb0] sm:$0xff]  ;;  %v3596_v47 = vld [vmem:[%s3935_s24 + $0xa8] sm:$0xff] }
 0x25a   : > { %3526 = vpow2.f32 %v2386_v33  ;;  %v3509_v24 = vpop.eup %3508  ;;  %2738 = vst [vmem:[%s4771_s17 + $0x80] sm:$0xff] %v2895_v21  ;;  %v2333_v28 = vmul.f32 -0.98, %v2297_v20  ;;  %v2299_v26 = vmul.f32 0.6931472, %v3507_v10  ;;  %v3597_v52 = vld [vmem:[%s3935_s24 + $0xb8] sm:$0xff] }
 0x25b   : > { %v3511_v37 = vpop.eup %3510  ;;  %v2420_v4 = vmul.f32 %v3591_v23, %v3509_v24  ;;  %v2388_v42 = vmul.f32 1.442695, %v2331_v25  ;;  %3528 = vpow2.f32 %v2390_v5  ;;  %v3598_v15 = vld [vmem:[%s3935_s24 + $0xc0] sm:$0xff]  ;;  %v3599_v33 = vld [vmem:[%s3935_s24 + $0xd0] sm:$0xff]  ;;  %v3600_v21 = vld [vmem:[%s3935_s24 + $0xc8] sm:$0xff] }
 0x25c   : > { %v3513_v6 = vpop.eup %3512  ;;  %v2392_v38 = vmul.f32 1.442695, %v2333_v28  ;;  %v2334_v17 = vmul.f32 -0.98, %v2299_v26  ;;  %v2303_v16 = vmul.f32 0.6931472, %v3511_v37 }
 0x25d   : > { %v3515_v18 = vpop.eup %3514  ;;  %v4949_v0 = vadd.f32 2.0, %v2420_v4  ;;  %3530 = vpow2.f32 %v2388_v42  ;;  %v2301_v44 = vmul.f32 0.6931472, %v3513_v6  ;;  %v3601_v24 = vld [vmem:[%s3935_s24 + $0xd8] sm:$0xff] }
 0x25e   : > { %v3517_v9 = vpop.eup %3516  ;;  %v2419_v30 = vmul.f32 %v3592_v13, %v3515_v18  ;;  %3532 = vpow2.f32 %v2392_v38  ;;  %v2336_v31 = vmul.f32 -0.98, %v2303_v16  ;;  %v2394_v1 = vmul.f32 1.442695, %v2334_v17 }
 0x25f   : > { %v3519_v7 = vpop.eup %3518  ;;  %3534 = vrsqrt.f32 %v4949_v0  ;;  %v2421_v27 = vmul.f32 %v3593_v41, %v3517_v9  ;;  %v2335_v62 = vmul.f32 -0.98, %v2301_v44  ;;  %vm2594_vm3 = vcmp.eq.f32.partialorder %v4949_v0, inf  ;;  %v3602_v41 = vld [vmem:[%s3935_s24 + $0xe0] sm:$0xff] }
 0x260   : > { %v3521_v40 = vpop.eup %3520  ;;  %v4953_v61 = vadd.f32 2.0, %v2419_v30  ;;  %v2422_v29 = vmul.f32 %v3594_v49, %v3519_v7  ;;  %3536 = vlog2.f32 %v3141_v48  ;;  %v2398_v53 = vmul.f32 1.442695, %v2336_v31 }
 0x261   : > { %v2424_v51 = vmul.f32 %v3595_v19, %v3521_v40  ;;  %v4959_v8 = vadd.f32 2.0, %v2421_v27  ;;  %v2396_v35 = vmul.f32 1.442695, %v2335_v62  ;;  %vm2596_vm4 = vcmp.eq.f32.partialorder %v4949_v0, 0.0  ;;  %v3603_v19 = vld [vmem:[%s3935_s24 + $0xf0] sm:$0xff] }
 0x262   : > { %v3523_v57 = vpop.eup %3522  ;;  %3538 = vrsqrt.f32 %v4953_v61  ;;  %v4961_v12 = vadd.f32 2.0, %v2422_v29  ;;  %v2597_v50 = vand.u32 2147483648, %v4949_v0  ;;  %vm2587_vm5 = vcmp.eq.f32.partialorder %v4953_v61, inf }
 0x263   : > { %v3525_v32 = vpop.eup %3524  ;;  %v4963_v45 = vadd.f32 2.0, %v2424_v51  ;;  %3540 = vpow2.f32 %v2394_v1  ;;  %v2423_v3 = vmul.f32 %v3596_v47, %v3523_v57  ;;  %vm2589_vm6 = vcmp.eq.f32.partialorder %v4953_v61, 0.0 }
 0x264   : > { %v3527_v2 = vpop.eup %3526  ;;  %v2425_v63 = vmul.f32 %v3597_v52, %v3525_v32  ;;  %3542 = vpow2.f32 %v2398_v53  ;;  %v2590_v11 = vand.u32 2147483648, %v4953_v61  ;;  %vm2601_vm7 = vcmp.eq.f32.partialorder %v4959_v8, inf }
 0x265   : > { %v2426_v14 = vmul.f32 %v3598_v15, %v3527_v2  ;;  %3544 = vrsqrt.f32 %v4959_v8  ;;  %v3529_v39 = vpop.eup %3528  ;;  %v4976_v60 = vadd.f32 2.0, %v2423_v3  ;;  %v2604_v55 = vand.u32 2147483648, %v4959_v8 }
 0x266   : > { %3546 = vrsqrt.f32 %v4961_v12  ;;  %v4978_v22 = vadd.f32 2.0, %v2425_v63  ;;  %vm2603_vm8 = vcmp.eq.f32.partialorder %v4959_v8, 0.0  ;;  %vm2608_vm9 = vcmp.eq.f32.partialorder %v4961_v12, inf }
 0x267   : > { %v3531_v36 = vpop.eup %3530  ;;  %3548 = vrsqrt.f32 %v4963_v45  ;;  %v4980_v56 = vadd.f32 2.0, %v2426_v14  ;;  %v2428_v59 = vmul.f32 %v3599_v33, %v3529_v39  ;;  %vm2610_vm10 = vcmp.eq.f32.partialorder %v4961_v12, 0.0 }
 0x268   : > { %v3533_v54 = vpop.eup %3532  ;;  %3550 = vpow2.f32 %v2396_v35  ;;  %v2427_v34 = vmul.f32 %v3600_v21, %v3531_v36  ;;  %v2611_v20 = vand.u32 2147483648, %v4961_v12  ;;  %vm2622_vm11 = vcmp.eq.f32.partialorder %v4963_v45, inf }
 0x269   : > { %v3535_v58 = vpop.eup %3534  ;;  %3552 = vrsqrt.f32 %v4976_v60  ;;  %vm2624_vm12 = vcmp.eq.f32.partialorder %v4963_v45, 0.0  ;;  %v2429_v5 = vmul.f32 %v3601_v24, %v3533_v54  ;;  %v2625_v23 = vand.u32 2147483648, %v4963_v45 }
 0x26a   : > { %v3537_v43 = vpop.eup %3536  ;;  %v2593_v46 = vmul.f32 %v3535_v58, %v4949_v0  ;;  %3554 = vrsqrt.f32 %v4978_v22  ;;  %vm2615_vm13 = vcmp.eq.f32.partialorder %v4976_v60, inf  ;;  %v5006_v6 = vadd.f32 2.0, %v2428_v59 }
 0x26b   : > { %3556 = vrsqrt.f32 %v4980_v56  ;;  %v2305_v4 = vmul.f32 0.6931472, %v3537_v43  ;;  %v5008_v38 = vadd.f32 2.0, %v2427_v34  ;;  %vm2617_vm14 = vcmp.eq.f32.partialorder %v4976_v60, 0.0 }
 0x26c   : > { %v3539_v10 = vpop.eup %3538  ;;  %v2595_v25 = vsel %vm2594_vm3, %v4949_v0, %v2593_v46  ;;  %v2618_v18 = vand.u32 2147483648, %v4976_v60  ;;  %vm2629_vm15 = vcmp.eq.f32.partialorder %v4978_v22, inf  ;;  %3558 = vrsqrt.f32 %v5006_v6 }
 0x26d   : > { %v3541_v28 = vpop.eup %3540  ;;  %v2598_v26 = vsel %vm2596_vm4, %v2597_v50, %v2595_v25  ;;  %v2586_v37 = vmul.f32 %v3539_v10, %v4953_v61  ;;  %v5021_v13 = vadd.f32 2.0, %v2429_v5  ;;  %vm2631_vm0 = vcmp.eq.f32.partialorder %v4978_v22, 0.0 }
 0x26e   : > { %v3543_v42 = vpop.eup %3542  ;;  %v2897_v48 = vadd.f32 -1.4142135, %v2598_v26  ;;  %v2632_v1 = vand.u32 2147483648, %v4978_v22  ;;  %3560 = vrsqrt.f32 %v5008_v38  ;;  %v2430_v27 = vmul.f32 %v3602_v41, %v3541_v28 }
 0x26f   : > { %v3545_v17 = vpop.eup %3544  ;;  %v2588_v16 = vsel %vm2587_vm5, %v4953_v61, %v2586_v37  ;;  %v2432_v51 = vmul.f32 %v3603_v19, %v3543_v42  ;;  %v2337_v53 = vmul.f32 -0.98, %v2305_v4  ;;  %3562 = vrsqrt.f32 %v5021_v13 }
 0x270   : > { %v3547_v0 = vpop.eup %3546  ;;  %2740 = vst [vmem:[%s4771_s17 + $0x90] sm:$0xff] %v2897_v48  ;;  %v2591_v44 = vsel %vm2589_vm6, %v2590_v11, %v2588_v16  ;;  %v2600_v9 = vmul.f32 %v3545_v17, %v4959_v8  ;;  %vm2636_vm1 = vcmp.eq.f32.partialorder %v4980_v56, inf  ;;  %vm2638_vm2 = vcmp.eq.f32.partialorder %v4980_v56, 0.0  ;;  %v3604_v11 = vld [vmem:[%s3935_s24 + $0xe8] sm:$0xff] }
 0x271   : > { %v3549_v30 = vpop.eup %3548  ;;  %v2896_v31 = vadd.f32 -1.4142135, %v2591_v44  ;;  %v2607_v7 = vmul.f32 %v3547_v0, %v4961_v12  ;;  %v2639_v35 = vand.u32 2147483648, %v4980_v56  ;;  %v2462_v36 = vadd.f32 2.0, %v2430_v27 }
 0x272   : > { %v2602_v40 = vsel %vm2601_vm7, %v4959_v8, %v2600_v9  ;;  %v2621_v61 = vmul.f32 %v3549_v30, %v4963_v45  ;;  %v3551_v49 = vpop.eup %3550  ;;  %v5058_v50 = vadd.f32 2.0, %v2432_v51  ;;  %v2400_v43 = vmul.f32 1.442695, %v2337_v53 }
 0x273   : > { %2739 = vst [vmem:[%s4771_s17 + $0x88] sm:$0xff] %v2896_v31  ;;  %v2605_v29 = vsel %vm2603_vm8, %v2604_v55, %v2602_v40  ;;  %v2609_v57 = vsel %vm2608_vm9, %v4961_v12, %v2607_v7  ;;  %v3553_v62 = vpop.eup %3552  ;;  %v2431_v55 = vmul.f32 %v3604_v11, %v3551_v49  ;;  %3564 = vrsqrt.f32 %v2462_v36  ;;  %v3605_v49 = vld [vmem:[%s3935_s24 + $0xf8] sm:$0xff] }
 0x274   : > { %v2898_v32 = vadd.f32 -1.4142135, %v2605_v29  ;;  %v2612_v2 = vsel %vm2610_vm10, %v2611_v20, %v2609_v57  ;;  %v2623_v47 = vsel %vm2622_vm11, %v4963_v45, %v2621_v61  ;;  %v3555_v8 = vpop.eup %3554  ;;  %v2614_v63 = vmul.f32 %v3553_v62, %v4976_v60 }
 0x275   : > { %v2899_v3 = vadd.f32 -1.4142135, %v2612_v2  ;;  %v2626_v52 = vsel %vm2624_vm12, %v2625_v23, %v2623_v47  ;;  %v3557_v15 = vpop.eup %3556  ;;  %v2628_v14 = vmul.f32 %v3555_v8, %v4978_v22  ;;  %3566 = vrsqrt.f32 %v5058_v50 }
 0x276   : > { %2741 = vst [vmem:[%s4771_s17 + $0x98] sm:$0xff] %v2898_v32  ;;  %v2901_v12 = vadd.f32 -1.4142135, %v2626_v52  ;;  %v2616_v45 = vsel %vm2615_vm13, %v4976_v60, %v2614_v63  ;;  %v2635_v39 = vmul.f32 %v3557_v15, %v4980_v56  ;;  %v3559_v60 = vpop.eup %3558  ;;  %vm2650_vm3 = vcmp.eq.f32.partialorder %v5006_v6, inf }
 0x277   : > { %2742 = vst [vmem:[%s4771_s17 + $0xa0] sm:$0xff] %v2899_v3  ;;  %v2619_v54 = vsel %vm2617_vm14, %v2618_v18, %v2616_v45  ;;  %v2630_v58 = vsel %vm2629_vm15, %v4978_v22, %v2628_v14  ;;  %v2649_v10 = vmul.f32 %v3559_v60, %v5006_v6  ;;  %v2653_v22 = vand.u32 2147483648, %v5006_v6 }
 0x278   : > { %2744 = vst [vmem:[%s4771_s17 + $0xb0] sm:$0xff] %v2901_v12  ;;  %v2900_v46 = vadd.f32 -1.4142135, %v2619_v54  ;;  %v2633_v33 = vsel %vm2631_vm0, %v2632_v1, %v2630_v58  ;;  %v2637_v59 = vsel %vm2636_vm1, %v4980_v56, %v2635_v39  ;;  %v3561_v25 = vpop.eup %3560  ;;  %v2463_v24 = vadd.f32 2.0, %v2431_v55 }
 0x279   : > { %v2902_v21 = vadd.f32 -1.4142135, %v2633_v33  ;;  %v2640_v34 = vsel %vm2638_vm2, %v2639_v35, %v2637_v59  ;;  %v2651_v5 = vsel %vm2650_vm3, %v5006_v6, %v2649_v10  ;;  %vm2652_vm4 = vcmp.eq.f32.partialorder %v5006_v6, 0.0  ;;  %v3563_v28 = vpop.eup %3562 }
 0x27a   : > { %2743 = vst [vmem:[%s4771_s17 + $0xa8] sm:$0xff] %v2900_v46  ;;  %v2903_v20 = vadd.f32 -1.4142135, %v2640_v34  ;;  %v2642_v56 = vmul.f32 %v3561_v25, %v5008_v38  ;;  %3568 = vpow2.f32 %v2400_v43  ;;  %v2654_v26 = vsel %vm2652_vm4, %v2653_v22, %v2651_v5 }
 0x27b   : > { %2745 = vst [vmem:[%s4771_s17 + $0xb8] sm:$0xff] %v2902_v21  ;;  %vm2643_vm5 = vcmp.eq.f32.partialorder %v5008_v38, inf  ;;  %v2646_v37 = vand.u32 2147483648, %v5008_v38  ;;  %3570 = vrsqrt.f32 %v2463_v24  ;;  %v2905_v23 = vadd.f32 -1.4142135, %v2654_v26 }
 0x27c   : > { %2746 = vst [vmem:[%s4771_s17 + $0xc0] sm:$0xff] %v2903_v20  ;;  %v2644_v4 = vsel %vm2643_vm5, %v5008_v38, %v2642_v56  ;;  %vm2645_vm6 = vcmp.eq.f32.partialorder %v5008_v38, 0.0  ;;  %v2656_v42 = vmul.f32 %v3563_v28, %v5021_v13  ;;  %vm2657_vm7 = vcmp.eq.f32.partialorder %v5021_v13, inf }
 0x27d   : > { %v2647_v48 = vsel %vm2645_vm6, %v2646_v37, %v2644_v4  ;;  %v2660_v6 = vand.u32 2147483648, %v5021_v13  ;;  %2748 = vst [vmem:[%s4771_s17 + $0xd0] sm:$0xff] %v2905_v23  ;;  %vm2659_vm8 = vcmp.eq.f32.partialorder %v5021_v13, 0.0  ;;  %v3565_v0 = vpop.eup %3564  ;;  %vm2664_vm9 = vcmp.eq.f32.partialorder %v2462_v36, inf }
 0x27e   : > { %v2904_v17 = vadd.f32 -1.4142135, %v2647_v48  ;;  %v2658_v16 = vsel %vm2657_vm7, %v5021_v13, %v2656_v42  ;;  %v2663_v9 = vmul.f32 %v3565_v0, %v2462_v36  ;;  %v2667_v30 = vand.u32 2147483648, %v2462_v36 }
 0x27f   : > { %v2661_v18 = vsel %vm2659_vm8, %v2660_v6, %v2658_v16  ;;  %v3567_v38 = vpop.eup %3566  ;;  %vm2666_vm10 = vcmp.eq.f32.partialorder %v2462_v36, 0.0  ;;  %vm2678_vm11 = vcmp.eq.f32.partialorder %v5058_v50, inf  ;;  %v2681_v13 = vand.u32 2147483648, %v5058_v50 }
 0x280   : > { %2747 = vst [vmem:[%s4771_s17 + $0xc8] sm:$0xff] %v2904_v17  ;;  %v2906_v44 = vadd.f32 -1.4142135, %v2661_v18  ;;  %v2665_v31 = vsel %vm2664_vm9, %v2462_v36, %v2663_v9  ;;  %v2677_v7 = vmul.f32 %v3567_v38, %v5058_v50  ;;  %vm2680_vm12 = vcmp.eq.f32.partialorder %v5058_v50, 0.0 }
 0x281   : > { %v2668_v40 = vsel %vm2666_vm10, %v2667_v30, %v2665_v31  ;;  %vm2671_vm13 = vcmp.eq.f32.partialorder %v2463_v24, inf  ;;  %v2674_v53 = vand.u32 2147483648, %v2463_v24  ;;  %vm2673_vm14 = vcmp.eq.f32.partialorder %v2463_v24, 0.0 }
 0x282   : > { %2749 = vst [vmem:[%s4771_s17 + $0xd8] sm:$0xff] %v2906_v44  ;;  %v2907_v41 = vadd.f32 -1.4142135, %v2668_v40  ;;  %v2679_v27 = vsel %vm2678_vm11, %v5058_v50, %v2677_v7 }
 0x283   : > { %v2682_v57 = vsel %vm2680_vm12, %v2681_v13, %v2679_v27 }
 0x284   : > { %v3569_v1 = vpop.eup %3568  ;;  %2750 = vst [vmem:[%s4771_s17 + $0xe0] sm:$0xff] %v2907_v41  ;;  %v2909_v51 = vadd.f32 -1.4142135, %v2682_v57 }
 0x285   : > { %v3571_v61 = vpop.eup %3570  ;;  %v2433_v29 = vmul.f32 %v3605_v49, %v3569_v1 }
 0x286   : > { %v2670_v19 = vmul.f32 %v3571_v61, %v2463_v24  ;;  %2752 = vst [vmem:[%s4771_s17 + $0xf0] sm:$0xff] %v2909_v51 }
 0x287   : > { %v2465_v62 = vadd.f32 2.0, %v2433_v29 }
 0x288   : > { %v2672_v32 = vsel %vm2671_vm13, %v2463_v24, %v2670_v19 }
 0x289   : > { %v2675_v2 = vsel %vm2673_vm14, %v2674_v53, %v2672_v32  ;;  %3572 = vrsqrt.f32 %v2465_v62  ;;  %vm2685_vm15 = vcmp.eq.f32.partialorder %v2465_v62, inf  ;;  %v2688_v52 = vand.u32 2147483648, %v2465_v62 }
 0x28a   : > { %v2908_v47 = vadd.f32 -1.4142135, %v2675_v2  ;;  %vm2687_vm0 = vcmp.eq.f32.partialorder %v2465_v62, 0.0 }
 0x28c   : > { %2751 = vst [vmem:[%s4771_s17 + $0xe8] sm:$0xff] %v2908_v47 }
 0x293   : > { %v3573_v8 = vpop.eup %3572 }
 0x294   : > { %v2684_v3 = vmul.f32 %v3573_v8, %v2465_v62 }
 0x296   : > { %v2686_v63 = vsel %vm2685_vm15, %v2465_v62, %v2684_v3 }
 0x297   : > { %v2689_v15 = vsel %vm2687_vm0, %v2688_v52, %v2686_v63 }
 0x298   : > { %v2910_v12 = vadd.f32 -1.4142135, %v2689_v15 }
 0x29a   : > { %2753 = vst [vmem:[%s4771_s17 + $0xf8] sm:$0xff] %v2910_v12 }
 0x29b   : > { %3677 = shalt.err (!%p3674_p5)
}
 0x29c   : > { %s3678_s30 = scalar_lea.hbm %s5110_s6, 4096  ;;  %s3682_s8 = scalar_lea.hbm %s5164_s2, 8192 }
 0x29d   : > { %p3679_p9 = scmp.ne.s32.totalorder %s5110_s6, %s3678_s30  ;;  %p3683_p3 = scmp.lt.u32.totalorder %s5110_s6, %s5164_s2 }
 0x29e   : > { %p3684_p7 = scmp.lt.u32.totalorder %s3682_s8, %s3678_s30  ;;  %p3686_p4 = scmp.lt.u32.totalorder %s3678_s30, %s5110_s6 }
 0x29f   : > { %p3680_p1 = pnand %p3679_p9, %p3873_p10 }
 0x2a0   : > { %p3685_p13 = por %p3684_p7, %p3683_p3 }
 0x2a1   : > { %p3681_p2 = pneg %p3680_p1 }
 0x2a2   : > { %p3687_p6 = por %p3686_p4, %p3685_p13 }
 0x2a4   : > { %p3688_p8 = pnand %p3687_p6, %p3681_p2 }
 0x2a6   : > { %3691 = shalt.err (!%p3688_p8)
}
 0x2a7   : > { %s3760_s24 = smov 512   ;;  %s3761_s17 = smov 32  }
 0x2a8   : > { %3308 = dma.vmem_to_hbm [thread:$0]  (%p3873_p10), %s5112_s21, 4096, %s5110_s6, %s2755_s7, %s3760_s24, %s3760_s24, %s3761_s17  }
 0x2a9 PF: > { %s2785_s19 = sand.u32 1, %s3730_s9   ;;  %p5355_p12 = scmp.ne.s32.totalorder %s5257_s20, 0 }
 0x2aa   : > { %p5356_p11 = scmp.ge.s32.totalorder %s3750_s14, 2  ;;  %s2786_s4 = scalar_lea.sflag [#allocation4], %s2785_s19 }
 0x2ac   : > { %p3319_p0 = pnand %p5356_p11, %p5355_p12 }
 0x2ae   : > { %3725 = dma.done.wait (!%p3319_p0), %s2786_s4, 4096  }
 0x2af   : > { %3727 = vsyncadd (!%p3319_p0), %s2786_s4, 4294963200  ;;  %s19_s14 = sadd.s32 1, %s3750_s14   ;;  %s5357_s9 = smov %s3734_s10 }
 0x2b0   : > { %p16_p5 = scmp.ge.s32.totalorder %s19_s14, 4   ;;  %s5358_s10 = smov %s3738_s11 }
 0x2b1   : > { %s5359_s11 = smov %s3882_s28  ;;  %s5360_s12 = smov %s3746_s13 }
 0x2b2   : > { %s5361_s13 = smov %s5363_s25  ;;  %18 = sbr.rel (!%p16_p5) target bundleno = 7 (0x7), region = 77 }
 0x2b9   :  { %2791 = vsyncpa [#allocation3], 1 }
 0x2ba   :  { %2793 = vsyncpa [#allocation3 + $0x1], 1 }
 0x2bb   :  { %2794 = vsyncpa [#allocation6], 1 }
 0x2bc   :  { %2795 = vsyncpa [#allocation4], 1 }
 0x2bd   :  { %2797 = vsyncpa [#allocation4 + $0x1], 1 }

</bundles_post_ra>
